<compile_context>
chip_gen: v6e
topology: v6e:2x2x1
jax: 0.10.0
libtpu: 0.0.40
codegen_flags: <defaults>
</compile_context>

<pallas_src>
import jax
import jax.numpy as jnp
from jax.experimental import pallas as pl
from jax.experimental.pallas import tpu as pltpu

_BN_EPS = 1e-5


def basic_block_kernel(x_ref, t1_ref, t2_ref, g1_ref, b1_ref, g2_ref, b2_ref,
                       red_ref, exp_ref, out_ref, pad_ref):
    """Fused BasicBlock forward on a lane-dense (N, H, W*C) activation view.

    x_ref    : (N, H, W*C)    f32   input, (W, C) collapsed into lanes
    t*_ref   : (3, W*C, W*C)  bf16  per-kh block-Toeplitz conv weights (W-padding = structural zeros)
    g*/b*_ref: (1, C)         f32   BatchNorm gamma / beta
    red_ref  : (W*C, C)       f32   lane -> channel reduction matrix
    exp_ref  : (C, W*C)       f32   channel -> lane broadcast matrix
    out_ref  : (N, H, W*C)    f32
    pad_ref  : (N, H+2, W*C)  bf16  H-padded scratch holding the current conv operand
    """
    N, H, WC = x_ref.shape
    C = g1_ref.shape[-1]
    W = WC // C
    M = N * H
    inv_cnt = 1.0 / (M * W)

    # Zero ONLY the two H-padding border rows (interior is overwritten right below);
    # W-padding needs no memory at all (structural zeros inside the Toeplitz weights).
    zrow = jnp.zeros((N, 1, WC), jnp.bfloat16)
    pad_ref[:, 0:1, :] = zrow
    pad_ref[:, H + 1:H + 2, :] = zrow
    pad_ref[:, 1:H + 1, :] = x_ref[...].astype(jnp.bfloat16)

    def conv3x3_bn(t_ref, g_ref, b_ref):
        # 3x3 conv = 3 lane-dense MXU matmuls (K = W*C, N_out = W*C), bf16 operands, f32 acc.
        acc = jnp.dot(pad_ref[:, 0:H, :].reshape(M, WC), t_ref[0],
                      preferred_element_type=jnp.float32)
        for kh in (1, 2):
            acc = acc + jnp.dot(pad_ref[:, kh:kh + H, :].reshape(M, WC), t_ref[kh],
                                preferred_element_type=jnp.float32)

        # Training-mode BatchNorm (batch stats, biased variance), one pass, all f32.
        s_l = jnp.sum(acc, axis=0, keepdims=True)                 # (1, W*C)
        ss_l = jnp.sum(acc * acc, axis=0, keepdims=True)          # (1, W*C)
        s_c = jnp.dot(s_l, red_ref[...], preferred_element_type=jnp.float32)    # (1, C)
        ss_c = jnp.dot(ss_l, red_ref[...], preferred_element_type=jnp.float32)  # (1, C)
        mean = s_c * inv_cnt
        var = jnp.maximum(ss_c * inv_cnt - mean * mean, 0.0)      # clamp fp32 cancellation
        scale_c = g_ref[...] * jax.lax.rsqrt(var + _BN_EPS)       # (1, C)
        shift_c = b_ref[...] - mean * scale_c                     # (1, C)
        scale_l = jnp.dot(scale_c, exp_ref[...], preferred_element_type=jnp.float32)  # (1, W*C)
        shift_l = jnp.dot(shift_c, exp_ref[...], preferred_element_type=jnp.float32)
        return acc * scale_l + shift_l                            # lane-dense FMA epilogue

    # conv1 -> bn1 -> relu
    y1 = jnp.maximum(conv3x3_bn(t1_ref, g1_ref, b1_ref), 0.0)     # (M, W*C) f32
    # Reuse the padded scratch for conv2's operand (border rows are still zero).
    pad_ref[:, 1:H + 1, :] = y1.reshape(N, H, WC).astype(jnp.bfloat16)
    # conv2 -> bn2 -> +residual -> relu (residual added from the VMEM-resident lane-dense x)
    y2 = conv3x3_bn(t2_ref, g2_ref, b2_ref)
    out_ref[...] = jnp.maximum(y2.reshape(N, H, WC) + x_ref[...], 0.0)


def basic_block_forward(x_nchw, params):
    """Pallas implementation of BasicBlock.forward. x_nchw: (N, C, H, W) float32."""
    x = jnp.transpose(x_nchw, (0, 2, 3, 1)).astype(jnp.float32)   # NCHW -> NHWC
    N, H, W, C = x.shape
    WC = W * C

    # residual=True / downsample=None / stride=1 requires inplanes == planes.
    assert params["conv1_w"].shape[0] == params["conv1_w"].shape[1] == C

    x_l = x.reshape(N, H, WC)                                      # lane-dense view (free)

    def toeplitz(w_oihw):
        # OIHW -> (kh, kw, Cin, Cout), then per-kh block-Toeplitz matrix T[kh] of shape
        # (W*Cin, W*Cout) with T[kh][wi*C+ci, w*C+co] = W[kh, wi-w+1, ci, co] (zero outside
        # the 3-tap window -> W-padding is structural).
        wt = jnp.transpose(w_oihw, (2, 3, 1, 0)).astype(jnp.float32)   # (3, 3, C, C)
        blk = jnp.arange(WC) // C
        ch = jnp.arange(WC) % C
        kw = blk[:, None] - blk[None, :] + 1                           # (WC, WC)
        valid = (kw >= 0) & (kw <= 2)
        kw_c = jnp.clip(kw, 0, 2)
        t = wt[:, kw_c, ch[:, None], ch[None, :]]                      # (3, WC, WC)
        t = jnp.where(valid[None, :, :], t, 0.0)
        return t.astype(jnp.bfloat16)                                  # bf16 MXU operands

    t1 = toeplitz(params["conv1_w"])
    t2 = toeplitz(params["conv2_w"])
    g1 = params["bn1_gamma"].reshape(1, C).astype(jnp.float32)
    b1 = params["bn1_beta"].reshape(1, C).astype(jnp.float32)
    g2 = params["bn2_gamma"].reshape(1, C).astype(jnp.float32)
    b2 = params["bn2_beta"].reshape(1, C).astype(jnp.float32)

    lane = jnp.arange(WC)
    red = (lane[:, None] % C == jnp.arange(C)[None, :]).astype(jnp.float32)   # (WC, C)
    expd = jnp.transpose(red)                                                  # (C, WC)

    vmem = pl.BlockSpec(memory_space=pltpu.MemorySpace.VMEM)
    flops = 2 * 3 * 2 * (N * H) * WC * WC                          # two convs, 3 matmuls each
    bytes_accessed = 4 * (2 * N * H * WC + 2 * WC * C + 4 * C) + 2 * (2 * 3 * WC * WC)

    out = pl.pallas_call(
        basic_block_kernel,
        out_shape=jax.ShapeDtypeStruct((N, H, WC), jnp.float32),
        in_specs=[vmem] * 9,
        out_specs=vmem,
        scratch_shapes=[pltpu.VMEM((N, H + 2, WC), jnp.bfloat16)],
        compiler_params=pltpu.CompilerParams(vmem_limit_bytes=32 * 1024 * 1024),
        cost_estimate=pl.CostEstimate(flops=flops, transcendentals=2 * C,
                                      bytes_accessed=bytes_accessed),
    )(x_l, t1, t2, g1, b1, g2, b2, red, expd)

    # TODO(synk): keep activations NHWC end-to-end in the calling model to drop these
    # per-block full-activation transposes.
    return jnp.transpose(out.reshape(N, H, W, C), (0, 3, 1, 2))    # NHWC -> NCHW


def reference_forward(x_nchw, params):
    """Pure-JAX f32 reference (same semantics) for a correctness check."""
    x = jnp.transpose(x_nchw, (0, 2, 3, 1)).astype(jnp.float32)
    w1 = jnp.transpose(params["conv1_w"], (2, 3, 1, 0))
    w2 = jnp.transpose(params["conv2_w"], (2, 3, 1, 0))

    def conv(inp, w):
        return jax.lax.conv_general_dilated(
            inp, w, window_strides=(1, 1), padding=((1, 1), (1, 1)),
            dimension_numbers=("NHWC", "HWIO", "NHWC"))

    def bn(y, g, b):
        m = jnp.mean(y, axis=(0, 1, 2), keepdims=True)
        v = jnp.mean(jnp.square(y - m), axis=(0, 1, 2), keepdims=True)
        return (y - m) * jax.lax.rsqrt(v + _BN_EPS) * g.reshape(1, 1, 1, -1) \
               + b.reshape(1, 1, 1, -1)

    out = jax.nn.relu(bn(conv(x, w1), params["bn1_gamma"], params["bn1_beta"]))
    out = bn(conv(out, w2), params["bn2_gamma"], params["bn2_beta"]) + x
    out = jax.nn.relu(out)
    return jnp.transpose(out, (0, 3, 1, 2))


if __name__ == "__main__":
    # Small shapes consistent with BasicBlock(inplanes=8, planes=8, stride=1); W*C = 128 lanes.
    N, C, H, W = 2, 8, 16, 16
    key = jax.random.PRNGKey(0)
    kx, kw1, kw2 = jax.random.split(key, 3)

    x = jax.random.normal(kx, (N, C, H, W), dtype=jnp.float32)

    fan_in = C * 3 * 3
    params = {
        # Conv2d weights in PyTorch OIHW layout, Kaiming-style deterministic init.
        "conv1_w": jax.random.normal(kw1, (C, C, 3, 3), jnp.float32) * (2.0 / fan_in) ** 0.5,
        "conv2_w": jax.random.normal(kw2, (C, C, 3, 3), jnp.float32) * (2.0 / fan_in) ** 0.5,
        # BatchNorm2d default init: gamma=1, beta=0.
        "bn1_gamma": jnp.ones((C,), jnp.float32),
        "bn1_beta": jnp.zeros((C,), jnp.float32),
        "bn2_gamma": jnp.ones((C,), jnp.float32),
        "bn2_beta": jnp.zeros((C,), jnp.float32),
    }

    out = jax.block_until_ready(basic_block_forward(x, params))
    ref = jax.block_until_ready(reference_forward(x, params))

    assert out.shape == (N, C, H, W) and out.dtype == jnp.float32
    # bf16 MXU operands (f32 accumulation / BN) vs the pure-f32 reference: expect ~1e-2-level
    # worst-case deviation across two conv+BN layers, so use a 5e-2 tolerance.
    max_err = float(jnp.max(jnp.abs(out - ref)))
    assert max_err < 5e-2, f"mismatch vs reference: {max_err}"
    print("KERNEL_OK")
</pallas_src>

<mosaic_0001>
module attributes {stable_mosaic.version = 11 : i64} {
  func.func @basic_block_kernel(%arg0: memref<2x16x128xf32, #tpu.memory_space<vmem>>, %arg1: memref<3x128x128xbf16, #tpu.memory_space<vmem>>, %arg2: memref<3x128x128xbf16, #tpu.memory_space<vmem>>, %arg3: memref<1x8xf32, #tpu.memory_space<vmem>>, %arg4: memref<1x8xf32, #tpu.memory_space<vmem>>, %arg5: memref<1x8xf32, #tpu.memory_space<vmem>>, %arg6: memref<1x8xf32, #tpu.memory_space<vmem>>, %arg7: memref<128x8xf32, #tpu.memory_space<vmem>>, %arg8: memref<8x128xf32, #tpu.memory_space<vmem>>, %arg9: memref<2x16x128xf32, #tpu.memory_space<vmem>>, %arg10: memref<2x18x128xbf16, #tpu.memory_space<vmem>>) attributes {dimension_semantics = [], scalar_prefetch = 0 : i64, scratch_operands = 1 : i64, tpu.core_type = #tpu.core_type<tc>} {
    %cst = arith.constant 0.000000e+00 : bf16
    %0 = vector.broadcast %cst : bf16 to vector<2x1x128xbf16>
    %c0 = arith.constant 0 : index
    %c0_0 = arith.constant 0 : index
    %c0_1 = arith.constant 0 : index
    %1 = vector.load %arg10[%c0, %c0_0, %c0_1] : memref<2x18x128xbf16, #tpu.memory_space<vmem>>, vector<2x1x128xbf16>
    tpu.vector_store %arg10[%c0, %c0_0, %c0_1], %0 {strides = array<i32>} : memref<2x18x128xbf16, #tpu.memory_space<vmem>>, vector<2x1x128xbf16>,
    %c0_2 = arith.constant 0 : index
    %c17 = arith.constant 17 : index
    %c0_3 = arith.constant 0 : index
    %2 = vector.load %arg10[%c0_2, %c17, %c0_3] : memref<2x18x128xbf16, #tpu.memory_space<vmem>>, vector<2x1x128xbf16>
    tpu.vector_store %arg10[%c0_2, %c17, %c0_3], %0 {strides = array<i32>} : memref<2x18x128xbf16, #tpu.memory_space<vmem>>, vector<2x1x128xbf16>,
    %c0_4 = arith.constant 0 : index
    %c0_5 = arith.constant 0 : index
    %c0_6 = arith.constant 0 : index
    %3 = vector.load %arg0[%c0_4, %c0_5, %c0_6] : memref<2x16x128xf32, #tpu.memory_space<vmem>>, vector<2x16x128xf32>
    %4 = arith.truncf %3 : vector<2x16x128xf32> to vector<2x16x128xbf16>
    %c0_7 = arith.constant 0 : index
    %c1 = arith.constant 1 : index
    %c0_8 = arith.constant 0 : index
    %5 = vector.load %arg10[%c0_7, %c1, %c0_8] : memref<2x18x128xbf16, #tpu.memory_space<vmem>>, vector<2x16x128xbf16>
    tpu.vector_store %arg10[%c0_7, %c1, %c0_8], %4 {strides = array<i32>} : memref<2x18x128xbf16, #tpu.memory_space<vmem>>, vector<2x16x128xbf16>,
    %c0_9 = arith.constant 0 : index
    %c0_10 = arith.constant 0 : index
    %c0_11 = arith.constant 0 : index
    %6 = vector.load %arg10[%c0_9, %c0_10, %c0_11] : memref<2x18x128xbf16, #tpu.memory_space<vmem>>, vector<2x16x128xbf16>
    %7 = vector.shape_cast %6 : vector<2x16x128xbf16> to vector<32x128xbf16>
    %c0_12 = arith.constant 0 : index
    %c0_13 = arith.constant 0 : index
    %c0_14 = arith.constant 0 : index
    %8 = vector.load %arg1[%c0_12, %c0_13, %c0_14] : memref<3x128x128xbf16, #tpu.memory_space<vmem>>, vector<1x128x128xbf16>
    %9 = vector.shape_cast %8 : vector<1x128x128xbf16> to vector<128x128xbf16>
    %cst_15 = arith.constant dense<0.000000e+00> : vector<32x128xf32>
    %10 = tpu.matmul %7, %9, %cst_15 {dimension_numbers = #tpu.dot_dimension_numbers<[1], [0], [0], [1], [0, 0, 1, 1], [], []>} : vector<32x128xbf16>, vector<128x128xbf16>, vector<32x128xf32> -> vector<32x128xf32>
    %c0_16 = arith.constant 0 : index
    %c1_17 = arith.constant 1 : index
    %c0_18 = arith.constant 0 : index
    %11 = vector.load %arg10[%c0_16, %c1_17, %c0_18] : memref<2x18x128xbf16, #tpu.memory_space<vmem>>, vector<2x16x128xbf16>
    %12 = vector.shape_cast %11 : vector<2x16x128xbf16> to vector<32x128xbf16>
    %c1_19 = arith.constant 1 : index
    %c0_20 = arith.constant 0 : index
    %c0_21 = arith.constant 0 : index
    %13 = vector.load %arg1[%c1_19, %c0_20, %c0_21] : memref<3x128x128xbf16, #tpu.memory_space<vmem>>, vector<1x128x128xbf16>
    %14 = vector.shape_cast %13 : vector<1x128x128xbf16> to vector<128x128xbf16>
    %cst_22 = arith.constant dense<0.000000e+00> : vector<32x128xf32>
    %15 = tpu.matmul %12, %14, %cst_22 {dimension_numbers = #tpu.dot_dimension_numbers<[1], [0], [0], [1], [0, 0, 1, 1], [], []>} : vector<32x128xbf16>, vector<128x128xbf16>, vector<32x128xf32> -> vector<32x128xf32>
    %16 = arith.addf %10, %15 : vector<32x128xf32>
    %c0_23 = arith.constant 0 : index
    %c2 = arith.constant 2 : index
    %c0_24 = arith.constant 0 : index
    %17 = vector.load %arg10[%c0_23, %c2, %c0_24] : memref<2x18x128xbf16, #tpu.memory_space<vmem>>, vector<2x16x128xbf16>
    %18 = vector.shape_cast %17 : vector<2x16x128xbf16> to vector<32x128xbf16>
    %c2_25 = arith.constant 2 : index
    %c0_26 = arith.constant 0 : index
    %c0_27 = arith.constant 0 : index
    %19 = vector.load %arg1[%c2_25, %c0_26, %c0_27] : memref<3x128x128xbf16, #tpu.memory_space<vmem>>, vector<1x128x128xbf16>
    %20 = vector.shape_cast %19 : vector<1x128x128xbf16> to vector<128x128xbf16>
    %cst_28 = arith.constant dense<0.000000e+00> : vector<32x128xf32>
    %21 = tpu.matmul %18, %20, %cst_28 {dimension_numbers = #tpu.dot_dimension_numbers<[1], [0], [0], [1], [0, 0, 1, 1], [], []>} : vector<32x128xbf16>, vector<128x128xbf16>, vector<32x128xf32> -> vector<32x128xf32>
    %22 = arith.addf %16, %21 : vector<32x128xf32>
    %cst_29 = arith.constant dense<0.000000e+00> : vector<128xf32>
    %23 = vector.multi_reduction <add>, %22, %cst_29 [0] : vector<32x128xf32> to vector<128xf32>
    %24 = vector.shape_cast %23 : vector<128xf32> to vector<1x128xf32>
    %25 = arith.mulf %22, %22 : vector<32x128xf32>
    %cst_30 = arith.constant dense<0.000000e+00> : vector<128xf32>
    %26 = vector.multi_reduction <add>, %25, %cst_30 [0] : vector<32x128xf32> to vector<128xf32>
    %27 = vector.shape_cast %26 : vector<128xf32> to vector<1x128xf32>
    %c0_31 = arith.constant 0 : index
    %c0_32 = arith.constant 0 : index
    %28 = vector.load %arg7[%c0_31, %c0_32] : memref<128x8xf32, #tpu.memory_space<vmem>>, vector<128x8xf32>
    %cst_33 = arith.constant dense<0.000000e+00> : vector<1x8xf32>
    %29 = tpu.matmul %24, %28, %cst_33 {dimension_numbers = #tpu.dot_dimension_numbers<[1], [0], [0], [1], [0, 0, 1, 1], [], []>} : vector<1x128xf32>, vector<128x8xf32>, vector<1x8xf32> -> vector<1x8xf32>
    %c0_34 = arith.constant 0 : index
    %c0_35 = arith.constant 0 : index
    %30 = vector.load %arg7[%c0_34, %c0_35] : memref<128x8xf32, #tpu.memory_space<vmem>>, vector<128x8xf32>
    %cst_36 = arith.constant dense<0.000000e+00> : vector<1x8xf32>
    %31 = tpu.matmul %27, %30, %cst_36 {dimension_numbers = #tpu.dot_dimension_numbers<[1], [0], [0], [1], [0, 0, 1, 1], [], []>} : vector<1x128xf32>, vector<128x8xf32>, vector<1x8xf32> -> vector<1x8xf32>
    %cst_37 = arith.constant 0.001953125 : f32
    %32 = vector.broadcast %cst_37 : f32 to vector<1x8xf32>
    %33 = arith.mulf %29, %32 : vector<1x8xf32>
    %cst_38 = arith.constant 0.001953125 : f32
    %34 = vector.broadcast %cst_38 : f32 to vector<1x8xf32>
    %35 = arith.mulf %31, %34 : vector<1x8xf32>
    %36 = arith.mulf %33, %33 : vector<1x8xf32>
    %37 = arith.subf %35, %36 : vector<1x8xf32>
    %cst_39 = arith.constant 0.000000e+00 : f32
    %38 = vector.broadcast %cst_39 : f32 to vector<1x8xf32>
    %39 = arith.maximumf %37, %38 : vector<1x8xf32>
    %c0_40 = arith.constant 0 : index
    %c0_41 = arith.constant 0 : index
    %40 = vector.load %arg3[%c0_40, %c0_41] : memref<1x8xf32, #tpu.memory_space<vmem>>, vector<1x8xf32>
    %cst_42 = arith.constant 9.99999974E-6 : f32
    %41 = vector.broadcast %cst_42 : f32 to vector<1x8xf32>
    %42 = arith.addf %39, %41 : vector<1x8xf32>
    %43 = math.rsqrt %42 : vector<1x8xf32>
    %44 = arith.mulf %40, %43 : vector<1x8xf32>
    %c0_43 = arith.constant 0 : index
    %c0_44 = arith.constant 0 : index
    %45 = vector.load %arg4[%c0_43, %c0_44] : memref<1x8xf32, #tpu.memory_space<vmem>>, vector<1x8xf32>
    %46 = arith.mulf %33, %44 : vector<1x8xf32>
    %47 = arith.subf %45, %46 : vector<1x8xf32>
    %c0_45 = arith.constant 0 : index
    %c0_46 = arith.constant 0 : index
    %48 = vector.load %arg8[%c0_45, %c0_46] : memref<8x128xf32, #tpu.memory_space<vmem>>, vector<8x128xf32>
    %cst_47 = arith.constant dense<0.000000e+00> : vector<1x128xf32>
    %49 = tpu.matmul %44, %48, %cst_47 {dimension_numbers = #tpu.dot_dimension_numbers<[1], [0], [0], [1], [0, 0, 1, 1], [], []>} : vector<1x8xf32>, vector<8x128xf32>, vector<1x128xf32> -> vector<1x128xf32>
    %c0_48 = arith.constant 0 : index
    %c0_49 = arith.constant 0 : index
    %50 = vector.load %arg8[%c0_48, %c0_49] : memref<8x128xf32, #tpu.memory_space<vmem>>, vector<8x128xf32>
    %cst_50 = arith.constant dense<0.000000e+00> : vector<1x128xf32>
    %51 = tpu.matmul %47, %50, %cst_50 {dimension_numbers = #tpu.dot_dimension_numbers<[1], [0], [0], [1], [0, 0, 1, 1], [], []>} : vector<1x8xf32>, vector<8x128xf32>, vector<1x128xf32> -> vector<1x128xf32>
    %52 = vector.broadcast %49 : vector<1x128xf32> to vector<32x128xf32>
    %53 = arith.mulf %22, %52 : vector<32x128xf32>
    %54 = vector.broadcast %51 : vector<1x128xf32> to vector<32x128xf32>
    %55 = arith.addf %53, %54 : vector<32x128xf32>
    %cst_51 = arith.constant 0.000000e+00 : f32
    %56 = vector.broadcast %cst_51 : f32 to vector<32x128xf32>
    %57 = arith.maximumf %55, %56 : vector<32x128xf32>
    %58 = vector.shape_cast %57 : vector<32x128xf32> to vector<2x16x128xf32>
    %59 = arith.truncf %58 : vector<2x16x128xf32> to vector<2x16x128xbf16>
    %c0_52 = arith.constant 0 : index
    %c1_53 = arith.constant 1 : index
    %c0_54 = arith.constant 0 : index
    %60 = vector.load %arg10[%c0_52, %c1_53, %c0_54] : memref<2x18x128xbf16, #tpu.memory_space<vmem>>, vector<2x16x128xbf16>
    tpu.vector_store %arg10[%c0_52, %c1_53, %c0_54], %59 {strides = array<i32>} : memref<2x18x128xbf16, #tpu.memory_space<vmem>>, vector<2x16x128xbf16>,
    %c0_55 = arith.constant 0 : index
    %c0_56 = arith.constant 0 : index
    %c0_57 = arith.constant 0 : index
    %61 = vector.load %arg10[%c0_55, %c0_56, %c0_57] : memref<2x18x128xbf16, #tpu.memory_space<vmem>>, vector<2x16x128xbf16>
    %62 = vector.shape_cast %61 : vector<2x16x128xbf16> to vector<32x128xbf16>
    %c0_58 = arith.constant 0 : index
    %c0_59 = arith.constant 0 : index
    %c0_60 = arith.constant 0 : index
    %63 = vector.load %arg2[%c0_58, %c0_59, %c0_60] : memref<3x128x128xbf16, #tpu.memory_space<vmem>>, vector<1x128x128xbf16>
    %64 = vector.shape_cast %63 : vector<1x128x128xbf16> to vector<128x128xbf16>
    %cst_61 = arith.constant dense<0.000000e+00> : vector<32x128xf32>
    %65 = tpu.matmul %62, %64, %cst_61 {dimension_numbers = #tpu.dot_dimension_numbers<[1], [0], [0], [1], [0, 0, 1, 1], [], []>} : vector<32x128xbf16>, vector<128x128xbf16>, vector<32x128xf32> -> vector<32x128xf32>
    %c0_62 = arith.constant 0 : index
    %c1_63 = arith.constant 1 : index
    %c0_64 = arith.constant 0 : index
    %66 = vector.load %arg10[%c0_62, %c1_63, %c0_64] : memref<2x18x128xbf16, #tpu.memory_space<vmem>>, vector<2x16x128xbf16>
    %67 = vector.shape_cast %66 : vector<2x16x128xbf16> to vector<32x128xbf16>
    %c1_65 = arith.constant 1 : index
    %c0_66 = arith.constant 0 : index
    %c0_67 = arith.constant 0 : index
    %68 = vector.load %arg2[%c1_65, %c0_66, %c0_67] : memref<3x128x128xbf16, #tpu.memory_space<vmem>>, vector<1x128x128xbf16>
    %69 = vector.shape_cast %68 : vector<1x128x128xbf16> to vector<128x128xbf16>
    %cst_68 = arith.constant dense<0.000000e+00> : vector<32x128xf32>
    %70 = tpu.matmul %67, %69, %cst_68 {dimension_numbers = #tpu.dot_dimension_numbers<[1], [0], [0], [1], [0, 0, 1, 1], [], []>} : vector<32x128xbf16>, vector<128x128xbf16>, vector<32x128xf32> -> vector<32x128xf32>
    %71 = arith.addf %65, %70 : vector<32x128xf32>
    %c0_69 = arith.constant 0 : index
    %c2_70 = arith.constant 2 : index
    %c0_71 = arith.constant 0 : index
    %72 = vector.load %arg10[%c0_69, %c2_70, %c0_71] : memref<2x18x128xbf16, #tpu.memory_space<vmem>>, vector<2x16x128xbf16>
    %73 = vector.shape_cast %72 : vector<2x16x128xbf16> to vector<32x128xbf16>
    %c2_72 = arith.constant 2 : index
    %c0_73 = arith.constant 0 : index
    %c0_74 = arith.constant 0 : index
    %74 = vector.load %arg2[%c2_72, %c0_73, %c0_74] : memref<3x128x128xbf16, #tpu.memory_space<vmem>>, vector<1x128x128xbf16>
    %75 = vector.shape_cast %74 : vector<1x128x128xbf16> to vector<128x128xbf16>
    %cst_75 = arith.constant dense<0.000000e+00> : vector<32x128xf32>
    %76 = tpu.matmul %73, %75, %cst_75 {dimension_numbers = #tpu.dot_dimension_numbers<[1], [0], [0], [1], [0, 0, 1, 1], [], []>} : vector<32x128xbf16>, vector<128x128xbf16>, vector<32x128xf32> -> vector<32x128xf32>
    %77 = arith.addf %71, %76 : vector<32x128xf32>
    %cst_76 = arith.constant dense<0.000000e+00> : vector<128xf32>
    %78 = vector.multi_reduction <add>, %77, %cst_76 [0] : vector<32x128xf32> to vector<128xf32>
    %79 = vector.shape_cast %78 : vector<128xf32> to vector<1x128xf32>
    %80 = arith.mulf %77, %77 : vector<32x128xf32>
    %cst_77 = arith.constant dense<0.000000e+00> : vector<128xf32>
    %81 = vector.multi_reduction <add>, %80, %cst_77 [0] : vector<32x128xf32> to vector<128xf32>
    %82 = vector.shape_cast %81 : vector<128xf32> to vector<1x128xf32>
    %c0_78 = arith.constant 0 : index
    %c0_79 = arith.constant 0 : index
    %83 = vector.load %arg7[%c0_78, %c0_79] : memref<128x8xf32, #tpu.memory_space<vmem>>, vector<128x8xf32>
    %cst_80 = arith.constant dense<0.000000e+00> : vector<1x8xf32>
    %84 = tpu.matmul %79, %83, %cst_80 {dimension_numbers = #tpu.dot_dimension_numbers<[1], [0], [0], [1], [0, 0, 1, 1], [], []>} : vector<1x128xf32>, vector<128x8xf32>, vector<1x8xf32> -> vector<1x8xf32>
    %c0_81 = arith.constant 0 : index
    %c0_82 = arith.constant 0 : index
    %85 = vector.load %arg7[%c0_81, %c0_82] : memref<128x8xf32, #tpu.memory_space<vmem>>, vector<128x8xf32>
    %cst_83 = arith.constant dense<0.000000e+00> : vector<1x8xf32>
    %86 = tpu.matmul %82, %85, %cst_83 {dimension_numbers = #tpu.dot_dimension_numbers<[1], [0], [0], [1], [0, 0, 1, 1], [], []>} : vector<1x128xf32>, vector<128x8xf32>, vector<1x8xf32> -> vector<1x8xf32>
    %cst_84 = arith.constant 0.001953125 : f32
    %87 = vector.broadcast %cst_84 : f32 to vector<1x8xf32>
    %88 = arith.mulf %84, %87 : vector<1x8xf32>
    %cst_85 = arith.constant 0.001953125 : f32
    %89 = vector.broadcast %cst_85 : f32 to vector<1x8xf32>
    %90 = arith.mulf %86, %89 : vector<1x8xf32>
    %91 = arith.mulf %88, %88 : vector<1x8xf32>
    %92 = arith.subf %90, %91 : vector<1x8xf32>
    %cst_86 = arith.constant 0.000000e+00 : f32
    %93 = vector.broadcast %cst_86 : f32 to vector<1x8xf32>
    %94 = arith.maximumf %92, %93 : vector<1x8xf32>
    %c0_87 = arith.constant 0 : index
    %c0_88 = arith.constant 0 : index
    %95 = vector.load %arg5[%c0_87, %c0_88] : memref<1x8xf32, #tpu.memory_space<vmem>>, vector<1x8xf32>
    %cst_89 = arith.constant 9.99999974E-6 : f32
    %96 = vector.broadcast %cst_89 : f32 to vector<1x8xf32>
    %97 = arith.addf %94, %96 : vector<1x8xf32>
    %98 = math.rsqrt %97 : vector<1x8xf32>
    %99 = arith.mulf %95, %98 : vector<1x8xf32>
    %c0_90 = arith.constant 0 : index
    %c0_91 = arith.constant 0 : index
    %100 = vector.load %arg6[%c0_90, %c0_91] : memref<1x8xf32, #tpu.memory_space<vmem>>, vector<1x8xf32>
    %101 = arith.mulf %88, %99 : vector<1x8xf32>
    %102 = arith.subf %100, %101 : vector<1x8xf32>
    %c0_92 = arith.constant 0 : index
    %c0_93 = arith.constant 0 : index
    %103 = vector.load %arg8[%c0_92, %c0_93] : memref<8x128xf32, #tpu.memory_space<vmem>>, vector<8x128xf32>
    %cst_94 = arith.constant dense<0.000000e+00> : vector<1x128xf32>
    %104 = tpu.matmul %99, %103, %cst_94 {dimension_numbers = #tpu.dot_dimension_numbers<[1], [0], [0], [1], [0, 0, 1, 1], [], []>} : vector<1x8xf32>, vector<8x128xf32>, vector<1x128xf32> -> vector<1x128xf32>
    %c0_95 = arith.constant 0 : index
    %c0_96 = arith.constant 0 : index
    %105 = vector.load %arg8[%c0_95, %c0_96] : memref<8x128xf32, #tpu.memory_space<vmem>>, vector<8x128xf32>
    %cst_97 = arith.constant dense<0.000000e+00> : vector<1x128xf32>
    %106 = tpu.matmul %102, %105, %cst_97 {dimension_numbers = #tpu.dot_dimension_numbers<[1], [0], [0], [1], [0, 0, 1, 1], [], []>} : vector<1x8xf32>, vector<8x128xf32>, vector<1x128xf32> -> vector<1x128xf32>
    %107 = vector.broadcast %104 : vector<1x128xf32> to vector<32x128xf32>
    %108 = arith.mulf %77, %107 : vector<32x128xf32>
    %109 = vector.broadcast %106 : vector<1x128xf32> to vector<32x128xf32>
    %110 = arith.addf %108, %109 : vector<32x128xf32>
    %111 = vector.shape_cast %110 : vector<32x128xf32> to vector<2x16x128xf32>
    %c0_98 = arith.constant 0 : index
    %c0_99 = arith.constant 0 : index
    %c0_100 = arith.constant 0 : index
    %112 = vector.load %arg0[%c0_98, %c0_99, %c0_100] : memref<2x16x128xf32, #tpu.memory_space<vmem>>, vector<2x16x128xf32>
    %113 = arith.addf %111, %112 : vector<2x16x128xf32>
    %cst_101 = arith.constant 0.000000e+00 : f32
    %114 = vector.broadcast %cst_101 : f32 to vector<2x16x128xf32>
    %115 = arith.maximumf %113, %114 : vector<2x16x128xf32>
    %c0_102 = arith.constant 0 : index
    %c0_103 = arith.constant 0 : index
    %c0_104 = arith.constant 0 : index
    %116 = vector.load %arg9[%c0_102, %c0_103, %c0_104] : memref<2x16x128xf32, #tpu.memory_space<vmem>>, vector<2x16x128xf32>
    tpu.vector_store %arg9[%c0_102, %c0_103, %c0_104], %115 {strides = array<i32>} : memref<2x16x128xf32, #tpu.memory_space<vmem>>, vector<2x16x128xf32>,
    return
  }
}

</mosaic_0001>

<bundles_post_ra>
// kernel: tpu_custom_call.1
= control target key start
LH: loop header
LB: loop body
LE: loop exit
PB: predicated region body
PF: predicated region fallthrough
CT: control target
= control target key end

     0   :  { %14 = vsyncpa [#allocation4], 0  ;;  %s3001_s0 = inlined_call_operand.vmem [shape: f32[2,16,128], index: 0, kind: input, shape index: {}]   ;;  %s3002_s1 = inlined_call_operand.hbm [shape: bf16[3,128,128], index: 1, kind: input, shape index: {}]   ;;  %s3003_s2 = inlined_call_operand.hbm [shape: bf16[3,128,128], index: 2, kind: input, shape index: {}]   ;;  %s3004_s3 = inlined_call_operand.vmem [shape: f32[1,8], index: 3, kind: input, shape index: {}]   ;;  %s3005_s4 = inlined_call_operand.vmem [shape: f32[1,8], index: 4, kind: input, shape index: {}]   ;;  %s3006_s5 = inlined_call_operand.vmem [shape: f32[1,8], index: 5, kind: input, shape index: {}]   ;;  %s3007_s6 = inlined_call_operand.vmem [shape: f32[1,8], index: 6, kind: input, shape index: {}]   ;;  %s3008_s7 = inlined_call_operand.vmem [shape: f32[128,8], index: 7, kind: input, shape index: {}]   ;;  %s3009_s8 = inlined_call_operand.vmem [shape: f32[8,128], index: 8, kind: input, shape index: {}]   ;;  %s3010_s9 = inlined_call_operand.hbm [shape: f32[2,16,128], index: 9, kind: output, shape index: {}]  }
   0x1   :  { %15 = vsyncpa [#allocation7], 0 }
   0x2   :  { %16 = vsyncpa [#allocation5], 0  ;;  %s2494_s30 = smov [#allocation3]  }
   0x3   :  { %s24_s10 = sshll.u32 %s2494_s30, 4  ;;  %s25_s10 = int_to_ptr.vmem [resolvable:$true] %s24_s10 }
   0x4   :  { %s2436_s11 = scalar_lea.vmem %s25_s10, 3072  ;;  %p2441_p1 = scmp.lt.s32.totalorder %s25_s10, %s25_s10 }
   0x5   :  { %p2437_p0 = scmp.ne.s32.totalorder %s25_s10, %s2436_s11  ;;  %p2442_p2 = scmp.lt.s32.totalorder %s2436_s11, %s2436_s11 }
   0x7   :  { %p2443_p3 = por %p2442_p2, %p2441_p1 }
   0x9   :  { %p2444_p4 = pnand %p2443_p3, %p2437_p0 }
   0xb   :  { %2447 = shalt.err (!%p2444_p4)
}
   0xc   :  { %s2495_s12 = smov 64   ;;  %s2496_s13 = smov 4  }
   0xd   :  { %30 = dma.hbm_to_vmem [thread:$0]  %s3002_s1, 3072, %s25_s10, [#allocation4], %s2495_s12, %s2495_s12, %s2496_s13  }
   0xe   :  { %s2497_s16 = smov [#allocation6]  }
   0xf   :  { %s36_s17 = sshll.u32 %s2497_s16, 4  ;;  %s37_s17 = int_to_ptr.vmem [resolvable:$true] %s36_s17 }
  0x10   :  { %s2456_s18 = scalar_lea.vmem %s37_s17, 3072  ;;  %p2461_p6 = scmp.lt.s32.totalorder %s37_s17, %s37_s17 }
  0x11   :  { %p2457_p5 = scmp.ne.s32.totalorder %s37_s17, %s2456_s18  ;;  %p2462_p7 = scmp.lt.s32.totalorder %s2456_s18, %s2456_s18 }
  0x13   :  { %p2463_p8 = por %p2462_p7, %p2461_p6 }
  0x15   :  { %p2464_p9 = pnand %p2463_p8, %p2457_p5 }
  0x17   :  { %2467 = shalt.err (!%p2464_p9)
}
  0x18   :  { %42 = dma.hbm_to_vmem [thread:$0]  %s3003_s2, 3072, %s37_s17, [#allocation7], %s2495_s12, %s2495_s12, %s2496_s13  }
  0x19   :  { %2488 = dma.done.wait [#allocation4], 3072  }
  0x1a   :  { %2489 = vsyncadd [#allocation4], 4294964224 }
  0x1b   :  { %2490 = dma.done.wait [#allocation7], 3072  }
  0x1c   :  { %2491 = vsyncadd [#allocation7], 4294964224  ;;  %v2372_v0 = vld [vmem:[#allocation3 + $0x78] sm:$0xff]   ;;  %v2374_v2 = vld [vmem:[#allocation3 + $0x70] sm:$0xff]   ;;  %vm62_vm0 = vcmask 1040384   ;;  %vm137_vm6 = vcmask 1043456  }
  0x1d   :  { %v2373_v1 = vld [vmem:[#allocation3 + $0x38] sm:$0xff]   ;;  %2083 = vmatprep.subr.bf16.mxu0 %v2372_v0  ;;  %v2375_v3 = vld [vmem:[#allocation3 + $0x30] sm:$0xff]   ;;  %v2376_v4 = vld [vmem:[#allocation3 + $0x68] sm:$0xff]   ;;  %vm63_vm1 = vsmask.f32 256  ;;  %vm463_vm11 = vcmask 1042432  }
  0x1e   :  { %2103 = vmatprep.subr.bf16.mxu1 %v2373_v1  ;;  %2084 = vmatpush3.bf16.msra.mxu0 %v2372_v0  ;;  %v2377_v5 = vld [vmem:[#allocation3 + $0x28] sm:$0xff]   ;;  %vm71_vm2 = vsmask.f32 7938  ;;  %v2378_v6 = vld [vmem:[#allocation3 + $0x60] sm:$0xff]   ;;  %vm2560_vm3 = vmand %vm62_vm0, %vm63_vm1  ;;  %vm95_vm5 = vsmask.f32 4368 }
  0x1f   :  { %2104 = vmatpush3.bf16.msra.mxu1 %v2373_v1  ;;  %2085 = vmatprep.subr.bf16.mxu0 %v2374_v2  ;;  %v2379_v7 = vld [vmem:[#allocation3 + $0x20] sm:$0xff]   ;;  %vm2565_vm4 = vmand %vm62_vm0, %vm71_vm2  ;;  %v2380_v10 = vld [vmem:[#allocation3 + $0x58] sm:$0xff]   ;;  %vm175_vm9 = vsmask.f32 3328  ;;  %vm176_vm10 = vsmask.f32 7440 }
  0x20   :  { %2105 = vmatprep.subr.bf16.mxu1 %v2375_v3  ;;  %v2381_v11 = vld [vmem:[#allocation3 + $0x18] sm:$0xff]   ;;  %v2382_v12 = vld [vmem:[#allocation3 + $0x50] sm:$0xff]   ;;  %v65_v14 = vld [vmem:[#allocation2] sm:$0x1]  ;;  %vm464_vm12 = vcmask 1046532   ;;  %vm2499_vm15 = vmmov 0  }
  0x21   :  { %v2383_v13 = vld [vmem:[#allocation3 + $0x10] sm:$0xff]   ;;  %v79_v16 = vld [vmem:[%s3001_s0] sm:$0xff]  ;;  %v66_v17 = vsel %vm2560_vm3, 0, %v65_v14  ;;  %v81_v22 = vld [vmem:[%s3001_s0 + $0x10] sm:$0xff]  ;;  %vm797_vm0 = vcmask 64512   ;;  %s2500_s25 = smov [#allocation8]  }
  0x22   :  { %2086 = vmatpush3.bf16.msra.mxu0 %v2374_v2  ;;  %v73_v15 = vld [vmem:[#allocation2 + $0x8] sm:$0x1]  ;;  %v1939_v20 = vpack.c.bf16 %v79_v16, %v79_v16  ;;  %v68_v21 = vld [vmem:[#allocation2 + $0xc] sm:$0x1]  ;;  %67 = vst [vmem:[#allocation2] sm:$0x1] %v66_v17  ;;  %v1941_v27 = vpack.c.bf16 %v81_v22, %v81_v22  ;;  %vm2591_vm7 = vmor %vm63_vm1, %vm95_vm5 }
  0x23   :  { %2106 = vmatpush3.bf16.msra.mxu1 %v2375_v3  ;;  %2087 = vmatprep.subr.bf16.mxu0 %v2376_v4  ;;  %v74_v18 = vsel %vm2565_vm4, 0, %v73_v15  ;;  %v80_v19 = vld [vmem:[%s3001_s0 + $0x8] sm:$0xff]  ;;  %v69_v24 = vsel %vm2560_vm3, 0, %v68_v21  ;;  %v76_v25 = vld [vmem:[#allocation2 + $0x14] sm:$0x1]  ;;  %v82_v26 = vld [vmem:[%s3001_s0 + $0x18] sm:$0xff] }
  0x24   :  { %2107 = vmatprep.subr.bf16.mxu1 %v2377_v5  ;;  %75 = vst [vmem:[#allocation2 + $0x8] sm:$0x1] %v74_v18  ;;  %v1940_v23 = vpack.c.bf16 %v80_v19, %v80_v19  ;;  %v2384_v28 = vld [vmem:[#allocation3 + $0x48] sm:$0xff]   ;;  %v98_v29 = vshrl.u32 %v1939_v20, 16  ;;  %v101_v30 = vshll.u32 %v1939_v20, 16  ;;  %v77_v31 = vsel %vm2565_vm4, 0, %v76_v25  ;;  %vm2597_vm8 = vmand %vm137_vm6, %vm71_vm2 }
  0x25   :  { %70 = vst [vmem:[#allocation2 + $0xc] sm:$0x1] %v69_v24  ;;  %v1942_v32 = vpack.c.bf16 %v82_v26, %v82_v26  ;;  %78 = vst [vmem:[#allocation2 + $0x14] sm:$0x1] %v77_v31  ;;  %v115_v35 = vshrl.u32 %v1941_v27, 16  ;;  %v118_v36 = vshll.u32 %v1941_v27, 16 }
  0x26   :  { %2088 = vmatpush3.bf16.msra.mxu0 %v2376_v4  ;;  %v106_v33 = vshrl.u32 %v1940_v23, 16  ;;  %v109_v34 = vshll.u32 %v1940_v23, 16  ;;  %v2385_v37 = vld [vmem:[#allocation3 + $0x8] sm:$0xff]   ;;  %v100_v38 = vrot.slane %v98_v29, 7  ;;  %v2386_v44 = vld [vmem:[#allocation3 + $0x40] sm:$0xff]   ;;  %v2613_v2 = vld [vmem:[#allocation3 + $0xb8] sm:$0xff]  }
  0x27   :  { %2108 = vmatpush3.bf16.msra.mxu1 %v2377_v5  ;;  %2089 = vmatprep.subr.bf16.mxu0 %v2378_v6  ;;  %v123_v39 = vshrl.u32 %v1942_v32, 16  ;;  %v126_v40 = vshll.u32 %v1942_v32, 16  ;;  %v117_v43 = vrot.slane %v115_v35, 7  ;;  %v2387_v53 = vld [vmem:[#allocation3] sm:$0xff]   ;;  %vm2630_vm13 = vmor %vm175_vm9, %vm176_vm10  ;;  %s1850_s26 = sshll.u32 %s2500_s25, 4  ;;  %s1851_s26 = int_to_ptr.vmem [resolvable:$true] %s1850_s26 }
  0x28   :  { %2109 = vmatprep.subr.bf16.mxu1 %v2379_v7  ;;  %v108_v42 = vrot.slane %v106_v33, 7  ;;  %v103_v45 = vor.u32 %v101_v30, %v100_v38  ;;  %v104_v46 = vrot.slane %v100_v38, 4  ;;  %vm2637_vm14 = vmor %vm463_vm11, %vm464_vm12  ;;  %v2418_v30 = vld [vmem:[#allocation6 + $0xa8] sm:$0xff]   ;;  %p2473_p11 = scmp.lt.s32.totalorder %s1851_s26, %s1851_s26 }
  0x29   :  { %v125_v48 = vrot.slane %v123_v39, 7  ;;  %v120_v51 = vor.u32 %v118_v36, %v117_v43  ;;  %v121_v52 = vrot.slane %v117_v43, 4  ;;  %v139_v54 = vld [vmem:[#allocation2] sm:$0xf] }
  0x2a   :  { %2090 = vmatpush3.bf16.msra.mxu0 %v2378_v6  ;;  %v111_v49 = vor.u32 %v109_v34, %v108_v42  ;;  %v113_v50 = vrot.slane %v108_v42, 4  ;;  %v140_v59 = vsel %vm2597_vm8, %v103_v45, %v139_v54  ;;  %v2391_v54 = vld [vmem:[#allocation3 + $0xb0] sm:$0xff]  }
  0x2b   :  { %2110 = vmatpush3.bf16.msra.mxu1 %v2379_v7  ;;  %2091 = vmatprep.subr.bf16.mxu0 %v2380_v10  ;;  %v143_v55 = vld [vmem:[#allocation2 + $0x8] sm:$0x1]  ;;  %v128_v56 = vor.u32 %v126_v40, %v125_v48  ;;  %v130_v57 = vrot.slane %v125_v48, 4  ;;  %141 = vst [vmem:[#allocation2] sm:$0xf] %v140_v59  ;;  %v2392_v59 = vld [vmem:[#allocation3 + $0xa8] sm:$0xff]  }
  0x2c   :  { %2111 = vmatprep.subr.bf16.mxu1 %v2381_v11  ;;  %v112_v58 = vsel %vm2591_vm7, %v104_v46, %v111_v49  ;;  %v144_v60 = vsel %vm2560_vm3, %v113_v50, %v143_v55  ;;  %v146_v61 = vld [vmem:[#allocation2 + $0xc] sm:$0xf]  ;;  %v150_v0 = vld [vmem:[#allocation2 + $0x14] sm:$0x1] }
  0x2d   :  { %142 = vst [vmem:[#allocation2 + $0x4] sm:$0xf] %v112_v58  ;;  %145 = vst [vmem:[#allocation2 + $0x8] sm:$0x1] %v144_v60  ;;  %v129_v62 = vsel %vm2591_vm7, %v121_v52, %v128_v56  ;;  %v147_v63 = vsel %vm2597_vm8, %v120_v51, %v146_v61  ;;  %v151_v1 = vsel %vm2560_vm3, %v130_v57, %v150_v0  ;;  %v2393_v60 = vld [vmem:[#allocation3 + $0xa0] sm:$0xff]   ;;  %v2394_v61 = vld [vmem:[#allocation3 + $0x98] sm:$0xff]  }
  0x2e   :  { %2092 = vmatpush3.bf16.msra.mxu0 %v2380_v10  ;;  %148 = vst [vmem:[#allocation2 + $0xc] sm:$0xf] %v147_v63  ;;  %149 = vst [vmem:[#allocation2 + $0x10] sm:$0xf] %v129_v62  ;;  %v2395_v62 = vld [vmem:[#allocation3 + $0x90] sm:$0xff]   ;;  %v2396_v0 = vld [vmem:[#allocation3 + $0x88] sm:$0xff]  }
  0x2f   :  { %2112 = vmatpush3.bf16.msra.mxu1 %v2381_v11  ;;  %2093 = vmatprep.subr.bf16.mxu0 %v2382_v12  ;;  %152 = vst [vmem:[#allocation2 + $0x14] sm:$0x1] %v151_v1 }
  0x30   :  { %2113 = vmatprep.subr.bf16.mxu1 %v2383_v13 }
  0x32   :  { %2094 = vmatpush3.bf16.msra.mxu0 %v2382_v12  ;;  %v2616_v3 = vld [vmem:[#allocation2] sm:$0xf] }
  0x33   :  { %2114 = vmatpush3.bf16.msra.mxu1 %v2383_v13  ;;  %2095 = vmatprep.subr.bf16.mxu0 %v2384_v28  ;;  %v179_v6 = vshrl.u32 %v2616_v3, 16  ;;  %v182_v7 = vshll.u32 %v2616_v3, 16  ;;  %v457_v21 = vld [vmem:[#allocation2] sm:$0xe] }
  0x34   :  { %2115 = vmatprep.subr.bf16.mxu1 %v2385_v37  ;;  %v154_v4 = vld [vmem:[#allocation2 + $0x4] sm:$0xf]  ;;  %v173_v5 = vld [vmem:[#allocation2 + $0x8] sm:$0x1]  ;;  %v1887_v34 = vrot.slane %v457_v21, 9  ;;  %v2745_v21 = vld [vmem:[%s3008_s7 + $0x30] sm:$0xff] }
  0x35   :  { %v188_v9 = vshll.u32 %v154_v4, 16  ;;  %v192_v10 = vshrl.u32 %v154_v4, 16  ;;  %v155_v11 = vld [vmem:[#allocation2 + $0xc] sm:$0xf]  ;;  %v198_v12 = vshll.u32 %v173_v5, 16  ;;  %v1877_v13 = vcombine.low %v2616_v3, %v154_v4 }
  0x36   :  { %2096 = vmatpush3.bf16.msra.mxu0 %v2384_v28  ;;  %v2621_v14 = vld [vmem:[#allocation2 + $0x10] sm:$0xf]  ;;  %v2623_v15 = vld [vmem:[#allocation2 + $0x14] sm:$0x1]  ;;  %v203_v16 = vshrl.u32 %v155_v11, 16  ;;  %v181_v17 = vrot.slane %v179_v6, 4 }
  0x37   :  { %2116 = vmatpush3.bf16.msra.mxu1 %v2385_v37  ;;  %2097 = vmatprep.subr.bf16.mxu0 %v2386_v44  ;;  %v184_v18 = vrot.slane %v182_v7, 5  ;;  %v190_v19 = vrot.slane %v188_v9, 5  ;;  %v194_v20 = vrot.slane %v192_v10, 4  ;;  %v200_v22 = vrot.slane %v198_v12, 5  ;;  %v458_v1 = vld [vmem:[#allocation2 + $0xc] sm:$0xe] }
  0x38   :  { %2117 = vmatprep.subr.bf16.mxu1 %v2387_v53  ;;  %2119 = vmatprep.mubr.bf16.mxu1 %v1877_v13  ;;  %v205_v23 = vrot.slane %v203_v16, 4  ;;  %v206_v24 = vshll.u32 %v155_v11, 16  ;;  %v212_v25 = vshll.u32 %v2621_v14, 16  ;;  %v216_v28 = vshrl.u32 %v2621_v14, 16  ;;  %v2397_v6 = vld [vmem:[#allocation3 + $0x80] sm:$0xff]   ;;  %v2670_v13 = vld [vmem:[%s3008_s7 + $0x70] sm:$0xff] }
  0x39   :  { %v185_v26 = vor.u32 %v184_v18, %v181_v17  ;;  %v195_v27 = vor.u32 %v194_v20, %v190_v19  ;;  %v222_v29 = vshll.u32 %v2623_v15, 16  ;;  %v1878_v33 = vcombine.low %v155_v11, %v2621_v14  ;;  %v2663_v11 = vld [vmem:[%s3008_s7 + $0x78] sm:$0xff]  ;;  %v2709_v17 = vld [vmem:[%s3008_s7 + $0x50] sm:$0xff]  ;;  %v2718_v18 = vld [vmem:[%s3008_s7 + $0x48] sm:$0xff] }
  0x3a   :  { %2098 = vmatpush3.bf16.msra.mxu0 %v2386_v44  ;;  %v208_v31 = vrot.slane %v206_v24, 5  ;;  %v214_v32 = vrot.slane %v212_v25, 5  ;;  %v218_v37 = vrot.slane %v216_v28, 4  ;;  %v468_v40 = vrot.slane %v154_v4, 5  ;;  %v2700_v16 = vld [vmem:[%s3008_s7 + $0x58] sm:$0xff]  ;;  %v2778_v25 = vld [vmem:[%s3008_s7 + $0x10] sm:$0xff] }
  0x3b   :  { %2118 = vmatpush3.bf16.msra.mxu1 %v2387_v53  ;;  %2123 = vmatprep.subr.bf16.mxu0 %v2613_v2  ;;  %v186_v35 = vrot.slane %v185_v26, 4  ;;  %v196_v36 = vrot.slane %v195_v27, 4  ;;  %v471_v42 = vrot.slane %v173_v5, 5  ;;  %v224_v46 = vrot.slane %v222_v29, 5  ;;  %v2736_v20 = vld [vmem:[%s3008_s7 + $0x38] sm:$0xff]  ;;  %v2787_v26 = vld [vmem:[%s3008_s7 + $0x8] sm:$0xff] }
  0x3c   :  { %v209_v39 = vor.u32 %v208_v31, %v205_v23  ;;  %v219_v45 = vor.u32 %v218_v37, %v214_v32  ;;  %v469_v50 = vsel %vm2637_vm14, %v1887_v34, %v468_v40  ;;  %v470_v51 = vrot.slane %v468_v40, 4  ;;  %v2763_v23 = vld [vmem:[%s3008_s7 + $0x20] sm:$0xff]  ;;  %v2769_v24 = vld [vmem:[%s3008_s7 + $0x18] sm:$0xff] }
  0x3d   :  { %v191_v43 = vsel %vm2630_vm13, %v186_v35, %v190_v19  ;;  %v201_v44 = vsel %vm2630_vm13, %v196_v36, %v200_v22  ;;  %v475_v63 = vrot.slane %v2621_v14, 5  ;;  %v1888_v4 = vrot.slane %v458_v1, 9  ;;  %v2683_v14 = vld [vmem:[%s3008_s7 + $0x68] sm:$0xff]  ;;  %v2727_v19 = vld [vmem:[%s3008_s7 + $0x40] sm:$0xff] }
  0x3e   :  { %2120 = vmatmul.mubr.bf16.vlgmr.msra.gmra.mxu1 %v1878_v33  ;;  %v1867_v48 = vcombine.low %v191_v43, %v201_v44  ;;  %v210_v49 = vrot.slane %v209_v39, 4  ;;  %v220_v52 = vrot.slane %v219_v45, 4  ;;  %v472_v55 = vsel %vm2637_vm14, %v470_v51, %v471_v42  ;;  %v2754_v22 = vld [vmem:[%s3008_s7 + $0x28] sm:$0xff]  ;;  %v2796_v27 = vld [vmem:[%s3008_s7] sm:$0xff] }
  0x3f   :  { %v1889_v57 = vcombine.low %v469_v50, %v472_v55  ;;  %v478_v5 = vrot.slane %v2623_v15, 5  ;;  %v476_v7 = vsel %vm2637_vm14, %v1888_v4, %v475_v63  ;;  %v2498_v12 = vmov 0.0   ;;  %v2691_v15 = vld [vmem:[%s3008_s7 + $0x60] sm:$0xff] }
  0x40   :  { %2099 = vmatprep.mubr.bf16.mxu0 %v1867_v48  ;;  %v215_v53 = vsel %vm2630_vm13, %v210_v49, %v214_v32  ;;  %v225_v56 = vsel %vm2630_vm13, %v220_v52, %v224_v46  ;;  %2143 = vmatprep.subr.mxu1 %v2498_v12 }
  0x41   :  { %v1868_v58 = vcombine.low %v215_v53, %v225_v56  ;;  %2144 = vmatpush3.msra.mxu1 %v2663_v11  ;;  %2175 = vmatprep.mubr.msk.f32.mxu1 %vm2499_vm15, %v2498_v12 }
  0x42   :  { %2145 = vmatprep.subr.mxu1 %v2498_v12 }
  0x43   :  { %2100 = vmatmul.mubr.bf16.vlgmr.msra.gmra.mxu0 %v1868_v58  ;;  %2146 = vmatpush3.msra.mxu1 %v2670_v13 }
  0x44   :  { %2124 = vmatpush3.bf16.msra.mxu0 %v2613_v2  ;;  %2139 = vmatprep.mubr.bf16.mxu0 %v1889_v57  ;;  %v477_v2 = vrot.slane %v475_v63, 4 }
  0x45   :  { %2125 = vmatprep.subr.bf16.mxu0 %v2391_v54  ;;  %2147 = vmatprep.subr.mxu1 %v2498_v12 }
  0x46   :  { %v479_v9 = vsel %vm2637_vm14, %v477_v2, %v478_v5  ;;  %2148 = vmatpush3.msra.mxu1 %v2683_v14 }
  0x47   :  { %v1890_v10 = vcombine.low %v476_v7, %v479_v9  ;;  %2149 = vmatprep.subr.mxu1 %v2498_v12 }
  0x48   :  { %2126 = vmatpush3.bf16.msra.mxu0 %v2391_v54  ;;  %2150 = vmatpush3.msra.mxu1 %v2691_v15 }
  0x49   :  { %2127 = vmatprep.subr.bf16.mxu0 %v2392_v59  ;;  %2151 = vmatprep.subr.mxu1 %v2498_v12 }
  0x4a   :  { %2152 = vmatpush3.msra.mxu1 %v2700_v16 }
  0x4b   :  { %2153 = vmatprep.subr.mxu1 %v2498_v12 }
  0x4c   :  { %2128 = vmatpush3.bf16.msra.mxu0 %v2392_v59  ;;  %2154 = vmatpush3.msra.mxu1 %v2709_v17 }
  0x4d   :  { %2129 = vmatprep.subr.bf16.mxu0 %v2393_v60  ;;  %2155 = vmatprep.subr.mxu1 %v2498_v12 }
  0x4e   :  { %2156 = vmatpush3.msra.mxu1 %v2718_v18 }
  0x4f   :  { %2157 = vmatprep.subr.mxu1 %v2498_v12 }
  0x50   :  { %2130 = vmatpush3.bf16.msra.mxu0 %v2393_v60  ;;  %2158 = vmatpush3.msra.mxu1 %v2727_v19 }
  0x51   :  { %2131 = vmatprep.subr.bf16.mxu0 %v2394_v61  ;;  %2159 = vmatprep.subr.mxu1 %v2498_v12 }
  0x52   :  { %2160 = vmatpush3.msra.mxu1 %v2736_v20 }
  0x53   :  { %2161 = vmatprep.subr.mxu1 %v2498_v12 }
  0x54   :  { %2132 = vmatpush3.bf16.msra.mxu0 %v2394_v61  ;;  %2162 = vmatpush3.msra.mxu1 %v2745_v21 }
  0x55   :  { %2133 = vmatprep.subr.bf16.mxu0 %v2395_v62  ;;  %2163 = vmatprep.subr.mxu1 %v2498_v12 }
  0x56   :  { %2164 = vmatpush3.msra.mxu1 %v2754_v22 }
  0x57   :  { %2165 = vmatprep.subr.mxu1 %v2498_v12 }
  0x58   :  { %2134 = vmatpush3.bf16.msra.mxu0 %v2395_v62  ;;  %2166 = vmatpush3.msra.mxu1 %v2763_v23 }
  0x59   :  { %2135 = vmatprep.subr.bf16.mxu0 %v2396_v0  ;;  %2167 = vmatprep.subr.mxu1 %v2498_v12 }
  0x5a   :  { %2168 = vmatpush3.msra.mxu1 %v2769_v24 }
  0x5b   :  { %2169 = vmatprep.subr.mxu1 %v2498_v12 }
  0x5c   :  { %2136 = vmatpush3.bf16.msra.mxu0 %v2396_v0  ;;  %2170 = vmatpush3.msra.mxu1 %v2778_v25 }
  0x5d   :  { %2137 = vmatprep.subr.bf16.mxu0 %v2397_v6  ;;  %2171 = vmatprep.subr.mxu1 %v2498_v12 }
  0x5e   :  { %2172 = vmatpush3.msra.mxu1 %v2787_v26 }
  0x5f   :  { %2173 = vmatprep.subr.mxu1 %v2498_v12 }
  0x60   :  { %2138 = vmatpush3.bf16.msra.mxu0 %v2397_v6  ;;  %2174 = vmatpush3.msra.mxu1 %v2796_v27 }
  0x61   :  { %2178 = vmatprep.subr.mxu0 %v2498_v12  ;;  %2213 = vmatprep.subr.mxu1 %v2498_v12 }
  0x63   :  { %2140 = vmatmul.mubr.bf16.vlgmr.msra.gmra.mxu0 %v1890_v10 }
  0x64   :  { %2179 = vmatpush3.msra.mxu0 %v2663_v11  ;;  %2210 = vmatprep.mubr.msk.f32.mxu0 %vm2499_vm15, %v2498_v12 }
  0x65   :  { %2180 = vmatprep.subr.mxu0 %v2498_v12 }
  0x66   :  { %2181 = vmatpush3.msra.mxu0 %v2670_v13 }
  0x67   :  { %2182 = vmatprep.subr.mxu0 %v2498_v12 }
  0x68   :  { %2183 = vmatpush3.msra.mxu0 %v2683_v14 }
  0x69   :  { %2184 = vmatprep.subr.mxu0 %v2498_v12 }
  0x6a   :  { %2185 = vmatpush3.msra.mxu0 %v2691_v15 }
  0x6b   :  { %2186 = vmatprep.subr.mxu0 %v2498_v12 }
  0x6c   :  { %2187 = vmatpush3.msra.mxu0 %v2700_v16 }
  0x6d   :  { %2188 = vmatprep.subr.mxu0 %v2498_v12 }
  0x6e   :  { %2189 = vmatpush3.msra.mxu0 %v2709_v17 }
  0x6f   :  { %2190 = vmatprep.subr.mxu0 %v2498_v12 }
  0x70   :  { %2191 = vmatpush3.msra.mxu0 %v2718_v18 }
  0x71   :  { %2192 = vmatprep.subr.mxu0 %v2498_v12 }
  0x72   :  { %2193 = vmatpush3.msra.mxu0 %v2727_v19 }
  0x73   :  { %2194 = vmatprep.subr.mxu0 %v2498_v12 }
  0x74   :  { %2195 = vmatpush3.msra.mxu0 %v2736_v20 }
  0x75   :  { %2196 = vmatprep.subr.mxu0 %v2498_v12 }
  0x76   :  { %2197 = vmatpush3.msra.mxu0 %v2745_v21 }
  0x77   :  { %2198 = vmatprep.subr.mxu0 %v2498_v12 }
  0x78   :  { %2199 = vmatpush3.msra.mxu0 %v2754_v22 }
  0x79   :  { %2200 = vmatprep.subr.mxu0 %v2498_v12 }
  0x7a   :  { %2201 = vmatpush3.msra.mxu0 %v2763_v23 }
  0x7b   :  { %2202 = vmatprep.subr.mxu0 %v2498_v12 }
  0x7c   :  { %2203 = vmatpush3.msra.mxu0 %v2769_v24 }
  0x7d   :  { %2204 = vmatprep.subr.mxu0 %v2498_v12 }
  0x7e   :  { %2205 = vmatpush3.msra.mxu0 %v2778_v25 }
  0x7f   :  { %2206 = vmatprep.subr.mxu0 %v2498_v12 }
  0x80   :  { %2207 = vmatpush3.msra.mxu0 %v2787_v26 }
  0x81   :  { %2208 = vmatprep.subr.mxu0 %v2498_v12 }
  0x82   :  { %2209 = vmatpush3.msra.mxu0 %v2796_v27 }
  0xfe   :  { %v2121_v29 = vpop.f32.mrf.mxu1 }
 0x100   :  { %v442_v32 = vpop.f32.mrf.mxu1 }
 0x102   :  { %v2122_v34 = vpop.f32.mrf.mxu1 }
 0x103   :  { %v2101_v28 = vpop.f32.mrf.mxu0 }
 0x104   :  { %v445_v37 = vpop.f32.mrf.mxu1  ;;  %v451_v43 = vadd.f32 %v2121_v29, %v2101_v28  ;;  %v2834_v29 = vld [vmem:[%s3009_s8] sm:$0xff] }
 0x105   :  { %v333_v31 = vpop.f32.mrf.mxu0 }
 0x106   :  { %v443_v40 = vadd.f32 %v442_v32, %v333_v31  ;;  %v2398_v31 = vld [vmem:[#allocation6 + $0x38] sm:$0xff]  }
 0x107   :  { %v2102_v33 = vpop.f32.mrf.mxu0  ;;  %2243 = vmatprep.subr.bf16.mxu0 %v2398_v31 }
 0x108   :  { %v454_v48 = vadd.f32 %v2122_v34, %v2102_v33 }
 0x109   :  { %v336_v35 = vpop.f32.mrf.mxu0 }
 0x10a   :  { %v446_v44 = vadd.f32 %v445_v37, %v336_v35 }
 0x123   :  { %v2141_v36 = vpop.f32.mrf.mxu0 }
 0x124   :  { %v2811_v49 = vadd.f32 %v2141_v36, %v451_v43 }
 0x125   :  { %v587_v39 = vpop.f32.mrf.mxu0 }
 0x126   :  { %v2809_v45 = vadd.f32 %v587_v39, %v443_v40  ;;  %v617_v55 = vmul.f32 %v2811_v49, %v2811_v49 }
 0x127   :  { %v2142_v42 = vpop.f32.mrf.mxu0 }
 0x128   :  { %v615_v51 = vmul.f32 %v2809_v45, %v2809_v45  ;;  %v2817_v52 = vadd.f32 %v2142_v42, %v454_v48 }
 0x129   :  { %v590_v46 = vpop.f32.mrf.mxu0 }
 0x12a   :  { %v2813_v50 = vadd.f32 %v590_v46, %v446_v44  ;;  %v618_v58 = vmul.f32 %v2817_v52, %v2817_v52  ;;  %v789_v44 = vld [vmem:[%s3004_s3] sm:$0x1] }
 0x12c   :  { %v606_v53 = vadd.f32 %v2813_v50, %v2809_v45  ;;  %v616_v54 = vmul.f32 %v2813_v50, %v2813_v50 }
 0x12e   :  { %v607_v56 = vadd.f32 %v606_v53, %v2811_v49  ;;  %v619_v57 = vadd.f32 %v616_v54, %v615_v51  ;;  %v793_v51 = vld [vmem:[%s3005_s4] sm:$0x1] }
 0x130   :  { %v608_v59 = vadd.f32 %v607_v56, %v2817_v52  ;;  %v620_v60 = vadd.f32 %v619_v57, %v617_v55  ;;  %v2399_v55 = vld [vmem:[#allocation6 + $0x30] sm:$0xff]   ;;  %v2400_v56 = vld [vmem:[#allocation6 + $0x78] sm:$0xff]   ;;  %v2401_v57 = vld [vmem:[#allocation6 + $0x28] sm:$0xff]  }
 0x132   :  { %v609_v61 = vrot.slane %v608_v59, 4  ;;  %v621_v62 = vadd.f32 %v620_v60, %v618_v58  ;;  %v2402_v58 = vld [vmem:[#allocation6 + $0x70] sm:$0xff]   ;;  %v2404_v60 = vld [vmem:[#allocation6 + $0x68] sm:$0xff]  }
 0x134   :  { %v610_v63 = vadd.f32 %v609_v61, %v608_v59  ;;  %v622_v0 = vrot.slane %v621_v62, 4  ;;  %v2403_v59 = vld [vmem:[#allocation6 + $0x20] sm:$0xff]   ;;  %v2405_v61 = vld [vmem:[#allocation6 + $0x18] sm:$0xff]  }
 0x136   :  { %v611_v1 = vrot.slane %v610_v63, 2  ;;  %v623_v4 = vadd.f32 %v622_v0, %v621_v62  ;;  %v2406_v62 = vld [vmem:[#allocation6 + $0x60] sm:$0xff]   ;;  %v2408_v0 = vld [vmem:[#allocation6 + $0x58] sm:$0xff]  }
 0x138   :  { %v612_v2 = vadd.f32 %v611_v1, %v610_v63  ;;  %v624_v5 = vrot.slane %v623_v4, 2  ;;  %v2407_v63 = vld [vmem:[#allocation6 + $0x10] sm:$0xff]   ;;  %v2409_v1 = vld [vmem:[#allocation6 + $0x8] sm:$0xff]  }
 0x13a   :  { %v613_v6 = vrot.slane %v612_v2, 1  ;;  %v625_v7 = vadd.f32 %v624_v5, %v623_v4  ;;  %v2410_v4 = vld [vmem:[#allocation6 + $0x50] sm:$0xff]   ;;  %v2413_v5 = vld [vmem:[#allocation6 + $0x48] sm:$0xff]  }
 0x13c   :  { %v614_v9 = vadd.f32 %v613_v6, %v612_v2  ;;  %v626_v10 = vrot.slane %v625_v7, 1  ;;  %v2411_v2 = vld [vmem:[#allocation6] sm:$0xff]  }
 0x13d   :  { %v2415_v6 = vld [vmem:[#allocation6 + $0x40] sm:$0xff]  }
 0x13e   :  { %2176 = vmatmul.mubr.f32.vlgmr.msra.gmra.mxu1 %v614_v9  ;;  %v627_v28 = vadd.f32 %v626_v10, %v625_v7  ;;  %v2850_v7 = vld [vmem:[#allocation6 + $0xb8] sm:$0xff]   ;;  %v944_v9 = vlaneseq }
 0x13f   :  { %2215 = vmatprep.mubr.msk.f32.mxu1 %vm2499_vm15, %v2498_v12  ;;  %2214 = vmatpush3.msra.mxu1 %v2834_v29 }
 0x140   :  { %2211 = vmatmul.mubr.f32.vlgmr.msra.gmra.mxu0 %v627_v28  ;;  %2218 = vmatprep.subr.mxu1 %v2498_v12  ;;  %v945_v10 = vshrl.u32 %v944_v9, 7 }
 0x141   :  { %2244 = vmatpush3.bf16.msra.mxu0 %v2398_v31 }
 0x142   :  { %2245 = vmatprep.subr.bf16.mxu0 %v2399_v55  ;;  %v2853_v28 = vsub.s32 0, %v945_v10 }
 0x145   :  { %2246 = vmatpush3.bf16.msra.mxu0 %v2399_v55 }
 0x146   :  { %2247 = vmatprep.subr.bf16.mxu0 %v2401_v57 }
 0x149   :  { %2248 = vmatpush3.bf16.msra.mxu0 %v2401_v57 }
 0x14a   :  { %2249 = vmatprep.subr.bf16.mxu0 %v2403_v59 }
 0x14d   :  { %2250 = vmatpush3.bf16.msra.mxu0 %v2403_v59 }
 0x14e   :  { %2251 = vmatprep.subr.bf16.mxu0 %v2405_v61 }
 0x151   :  { %2252 = vmatpush3.bf16.msra.mxu0 %v2405_v61 }
 0x152   :  { %2253 = vmatprep.subr.bf16.mxu0 %v2407_v63 }
 0x155   :  { %2254 = vmatpush3.bf16.msra.mxu0 %v2407_v63 }
 0x156   :  { %2255 = vmatprep.subr.bf16.mxu0 %v2409_v1 }
 0x159   :  { %2256 = vmatpush3.bf16.msra.mxu0 %v2409_v1 }
 0x15a   :  { %2257 = vmatprep.subr.bf16.mxu0 %v2411_v2 }
 0x15d   :  { %2258 = vmatpush3.bf16.msra.mxu0 %v2411_v2 }
 0x15e   :  { %2283 = vmatprep.subr.mxu0 %v2498_v12 }
 0x1fe   :  { %v710_v32 = vpop.f32.mrf.mxu1 }
 0x1ff   :  { %v784_v33 = vmul.f32 0.001953125, %v710_v32 }
 0x200   :  { %v2177_v34 = vpop.f32.mrf.mxu1  ;;  %v780_v35 = vpop.f32.mrf.mxu0 }
 0x201   :  { %v786_v36 = vmul.f32 %v784_v33, %v784_v33  ;;  %v785_v37 = vmul.f32 0.001953125, %v780_v35 }
 0x202   :  { %v2212_v39 = vpop.f32.mrf.mxu0 }
 0x203   :  { %v787_v40 = vsub.f32 %v785_v37, %v786_v36 }
 0x205   :  { %v788_v42 = vmax.f32 %v787_v40, 0.0 }
 0x207   :  { %v790_v43 = vadd.f32 1e-05, %v788_v42 }
 0x209   :  { %2424 = vrsqrt.f32 %v790_v43 }
 0x216   :  { %v2425_v46 = vpop.eup %2424 }
 0x217   :  { %v792_v48 = vmul.f32 %v2425_v46, %v789_v44 }
 0x219   :  { %2216 = vmatmul.mubr.msk.f32.vlgmr.msra.gmra.mxu1 %vm797_vm0, %v792_v48  ;;  %v794_v53 = vmul.f32 %v792_v48, %v784_v33 }
 0x21a   :  { %2219 = vmatpush3.msra.mxu1 %v2834_v29  ;;  %2220 = vmatprep.mubr.msk.f32.mxu1 %vm2499_vm15, %v2498_v12 }
 0x21b   :  { %v795_v54 = vsub.f32 %v793_v51, %v794_v53  ;;  %2223 = vmatprep.subr.bf16.mxu1 %v2400_v56 }
 0x21d   :  { %2221 = vmatmul.mubr.msk.f32.vlgmr.msra.gmra.mxu1 %vm797_vm0, %v795_v54 }
 0x21e   :  { %2224 = vmatpush3.bf16.msra.mxu1 %v2400_v56 }
 0x21f   :  { %2225 = vmatprep.subr.bf16.mxu1 %v2402_v58 }
 0x222   :  { %2226 = vmatpush3.bf16.msra.mxu1 %v2402_v58 }
 0x223   :  { %2227 = vmatprep.subr.bf16.mxu1 %v2404_v60 }
 0x226   :  { %2228 = vmatpush3.bf16.msra.mxu1 %v2404_v60 }
 0x227   :  { %2229 = vmatprep.subr.bf16.mxu1 %v2406_v62 }
 0x22a   :  { %2230 = vmatpush3.bf16.msra.mxu1 %v2406_v62 }
 0x22b   :  { %2231 = vmatprep.subr.bf16.mxu1 %v2408_v0 }
 0x22e   :  { %2232 = vmatpush3.bf16.msra.mxu1 %v2408_v0 }
 0x22f   :  { %2233 = vmatprep.subr.bf16.mxu1 %v2410_v4 }
 0x232   :  { %2234 = vmatpush3.bf16.msra.mxu1 %v2410_v4 }
 0x233   :  { %2235 = vmatprep.subr.bf16.mxu1 %v2413_v5 }
 0x236   :  { %2236 = vmatpush3.bf16.msra.mxu1 %v2413_v5  ;;  %v1019_v5 = vld [vmem:[#allocation2 + $0x8] sm:$0x1] }
 0x237   :  { %2237 = vmatprep.subr.bf16.mxu1 %v2415_v6 }
 0x23a   :  { %2238 = vmatpush3.bf16.msra.mxu1 %v2415_v6 }
 0x23b   :  { %2263 = vmatprep.subr.bf16.mxu1 %v2850_v7 }
 0x2d9   :  { %v867_v31 = vpop.f32.mrf.mxu1 }
 0x2da   :  { %v947_v32 = vrot.slane %v867_v31, %v2853_v28 }
 0x2db   :  { %v2217_v33 = vpop.f32.mrf.mxu1 }
 0x2dc   :  { %v948_v34 = vmul.f32 %v947_v32, %v2809_v45  ;;  %v949_v36 = vmul.f32 %v947_v32, %v2813_v50  ;;  %v950_v37 = vmul.f32 %v947_v32, %v2811_v49  ;;  %v951_v39 = vmul.f32 %v947_v32, %v2817_v52  ;;  %v1022_v32 = vld [vmem:[#allocation2 + $0xc] sm:$0xf]  ;;  %v1026_v33 = vld [vmem:[#allocation2 + $0x14] sm:$0x1] }
 0x2dd   :  { %v940_v35 = vpop.f32.mrf.mxu1 }
 0x2de   :  { %v955_v40 = vrot.slane %v940_v35, %v2853_v28 }
 0x2df   :  { %v2222_v42 = vpop.f32.mrf.mxu1 }
 0x2e0   :  { %v956_v43 = vadd.f32 %v955_v40, %v948_v34  ;;  %v957_v44 = vadd.f32 %v955_v40, %v949_v36  ;;  %v958_v46 = vadd.f32 %v955_v40, %v950_v37  ;;  %v959_v48 = vadd.f32 %v955_v40, %v951_v39 }
 0x2e2   :  { %v960_v51 = vmax.f32 %v956_v43, 0.0  ;;  %v961_v53 = vmax.f32 %v957_v44, 0.0  ;;  %v962_v54 = vmax.f32 %v958_v46, 0.0  ;;  %v963_v55 = vmax.f32 %v959_v48, 0.0 }
 0x2e4   :  { %v1943_v56 = vpack.c.bf16 %v960_v51, %v960_v51  ;;  %v1944_v45 = vpack.c.bf16 %v961_v53, %v961_v53  ;;  %v1945_v57 = vpack.c.bf16 %v962_v54, %v962_v54  ;;  %v1946_v58 = vpack.c.bf16 %v963_v55, %v963_v55 }
 0x2e6   :  { %v977_v50 = vshrl.u32 %v1943_v56, 16  ;;  %v985_v59 = vshrl.u32 %v1944_v45, 16  ;;  %v994_v49 = vshrl.u32 %v1945_v57, 16  ;;  %v1002_v60 = vshrl.u32 %v1946_v58, 16 }
 0x2e7   :  { %v980_v61 = vshll.u32 %v1943_v56, 16  ;;  %v988_v63 = vshll.u32 %v1944_v45, 16  ;;  %v997_v1 = vshll.u32 %v1945_v57, 16  ;;  %v1005_v2 = vshll.u32 %v1946_v58, 16 }
 0x2e8   :  { %v979_v52 = vrot.slane %v977_v50, 7  ;;  %v987_v62 = vrot.slane %v985_v59, 7  ;;  %v996_v0 = vrot.slane %v994_v49, 7  ;;  %v1004_v4 = vrot.slane %v1002_v60, 7 }
 0x2ea   :  { %v982_v6 = vor.u32 %v980_v61, %v979_v52  ;;  %v983_v9 = vrot.slane %v979_v52, 4  ;;  %v990_v10 = vor.u32 %v988_v63, %v987_v62  ;;  %v992_v31 = vrot.slane %v987_v62, 4 }
 0x2eb   :  { %v999_v34 = vor.u32 %v997_v1, %v996_v0  ;;  %v1000_v35 = vrot.slane %v996_v0, 4  ;;  %v1007_v36 = vor.u32 %v1005_v2, %v1004_v4  ;;  %v1009_v37 = vrot.slane %v1004_v4, 4 }
 0x2ec   :  { %v991_v39 = vsel %vm2591_vm7, %v983_v9, %v990_v10  ;;  %v1016_v40 = vsel %vm2597_vm8, %v982_v6, %v2616_v3  ;;  %v1020_v42 = vsel %vm2560_vm3, %v992_v31, %v1019_v5 }
 0x2ed   :  { %v1008_v43 = vsel %vm2591_vm7, %v1000_v35, %v1007_v36  ;;  %1017 = vst [vmem:[#allocation2] sm:$0xf] %v1016_v40  ;;  %1018 = vst [vmem:[#allocation2 + $0x4] sm:$0xf] %v991_v39  ;;  %v1023_v44 = vsel %vm2597_vm8, %v999_v34, %v1022_v32  ;;  %v1027_v46 = vsel %vm2560_vm3, %v1009_v37, %v1026_v33 }
 0x2ee   :  { %1021 = vst [vmem:[#allocation2 + $0x8] sm:$0x1] %v1020_v42  ;;  %1024 = vst [vmem:[#allocation2 + $0xc] sm:$0xf] %v1023_v44 }
 0x2ef   :  { %1025 = vst [vmem:[#allocation2 + $0x10] sm:$0xf] %v1008_v43  ;;  %1028 = vst [vmem:[#allocation2 + $0x14] sm:$0x1] %v1027_v46 }
 0x2f4   :  { %v1029_v48 = vld [vmem:[#allocation2] sm:$0xf]  ;;  %v1030_v3 = vld [vmem:[#allocation2 + $0x4] sm:$0xf] }
 0x2f5   :  { %v1049_v51 = vld [vmem:[#allocation2 + $0x8] sm:$0x1]  ;;  %v1052_v53 = vshrl.u32 %v1029_v48, 16  ;;  %v1055_v54 = vshll.u32 %v1029_v48, 16  ;;  %v1065_v55 = vshrl.u32 %v1030_v3, 16  ;;  %v1915_v41 = vcombine.low %v1029_v48, %v1030_v3 }
 0x2f6   :  { %v1031_v56 = vld [vmem:[#allocation2 + $0xc] sm:$0xf]  ;;  %v2874_v45 = vld [vmem:[#allocation2 + $0x10] sm:$0xf]  ;;  %v1061_v47 = vshll.u32 %v1030_v3, 16  ;;  %v1071_v50 = vshll.u32 %v1049_v51, 16 }
 0x2f7   :  { %v1076_v57 = vshrl.u32 %v1031_v56, 16  ;;  %v1079_v58 = vshll.u32 %v1031_v56, 16  ;;  %v1054_v59 = vrot.slane %v1052_v53, 4  ;;  %v1057_v8 = vrot.slane %v1055_v54, 5  ;;  %2259 = vmatprep.mubr.bf16.mxu0 %v1915_v41  ;;  %v2878_v0 = vld [vmem:[#allocation2 + $0x14] sm:$0x1] }
 0x2f8   :  { %v1089_v49 = vshrl.u32 %v2874_v45, 16  ;;  %v1916_v60 = vcombine.low %v1031_v56, %v2874_v45  ;;  %v1063_v62 = vrot.slane %v1061_v47, 5  ;;  %v1067_v63 = vrot.slane %v1065_v55, 4  ;;  %v1330_v32 = vld [vmem:[#allocation2] sm:$0xe]  ;;  %v2417_v56 = vld [vmem:[#allocation6 + $0xb0] sm:$0xff]  }
 0x2f9   :  { %v1078_v52 = vrot.slane %v1076_v57, 4  ;;  %v1081_v61 = vrot.slane %v1079_v58, 5  ;;  %v1058_v1 = vor.u32 %v1057_v8, %v1054_v59  ;;  %v1085_v4 = vshll.u32 %v2874_v45, 16  ;;  %v2419_v58 = vld [vmem:[#allocation6 + $0xa0] sm:$0xff]   ;;  %v2421_v47 = vld [vmem:[#allocation6 + $0x90] sm:$0xff]  }
 0x2fa   :  { %2260 = vmatmul.mubr.bf16.vlgmr.msra.gmra.mxu0 %v1916_v60  ;;  %v1091_v2 = vrot.slane %v1089_v49, 4  ;;  %v1068_v5 = vor.u32 %v1067_v63, %v1063_v62  ;;  %v1095_v31 = vshll.u32 %v2878_v0, 16  ;;  %v1338_v33 = vrot.slane %v1030_v3, 5  ;;  %v2423_v8 = vld [vmem:[#allocation6 + $0x80] sm:$0xff]   ;;  %v1331_v49 = vld [vmem:[#allocation2 + $0xc] sm:$0xe] }
 0x2fb   :  { %v1082_v6 = vor.u32 %v1081_v61, %v1078_v52  ;;  %2284 = vmatpush3.msra.mxu0 %v2663_v11  ;;  %2315 = vmatprep.mubr.msk.f32.mxu0 %vm2499_vm15, %v2498_v12  ;;  %v1059_v9 = vrot.slane %v1058_v1, 4  ;;  %v1087_v10 = vrot.slane %v1085_v4, 5  ;;  %v1073_v35 = vrot.slane %v1071_v50, 5  ;;  %v2422_v50 = vld [vmem:[#allocation6 + $0x88] sm:$0xff]  }
 0x2fc   :  { %2285 = vmatprep.subr.mxu0 %v2498_v12  ;;  %v1069_v34 = vrot.slane %v1068_v5, 4  ;;  %v1340_v40 = vrot.slane %v1338_v33, 4  ;;  %v1925_v43 = vrot.slane %v1330_v32, 9  ;;  %v1341_v44 = vrot.slane %v1049_v51, 5 }
 0x2fd   :  { %v1083_v36 = vrot.slane %v1082_v6, 4  ;;  %2286 = vmatpush3.msra.mxu0 %v2670_v13  ;;  %v1064_v37 = vsel %vm2630_vm13, %v1059_v9, %v1063_v62  ;;  %v1092_v39 = vor.u32 %v1091_v2, %v1087_v10  ;;  %v1097_v53 = vrot.slane %v1095_v31, 5 }
 0x2fe   :  { %2287 = vmatprep.subr.mxu0 %v2498_v12  ;;  %v1074_v42 = vsel %vm2630_vm13, %v1069_v34, %v1073_v35  ;;  %v1342_v54 = vsel %vm2637_vm14, %v1340_v40, %v1341_v44  ;;  %v1339_v41 = vsel %vm2637_vm14, %v1925_v43, %v1338_v33  ;;  %v1345_v59 = vrot.slane %v2874_v45, 5 }
 0x2ff   :  { %2288 = vmatpush3.msra.mxu0 %v2683_v14  ;;  %v1905_v46 = vcombine.low %v1064_v37, %v1074_v42  ;;  %v1088_v48 = vsel %vm2630_vm13, %v1083_v36, %v1087_v10  ;;  %v1093_v3 = vrot.slane %v1092_v39, 4  ;;  %v1927_v57 = vcombine.low %v1339_v41, %v1342_v54 }
 0x300   :  { %2289 = vmatprep.subr.mxu0 %v2498_v12  ;;  %v1347_v60 = vrot.slane %v1345_v59, 4  ;;  %v1926_v52 = vrot.slane %v1331_v49, 9  ;;  %v1348_v61 = vrot.slane %v2878_v0, 5 }
 0x301   :  { %2290 = vmatpush3.msra.mxu0 %v2691_v15  ;;  %2239 = vmatprep.mubr.bf16.mxu1 %v1905_v46  ;;  %v1098_v55 = vsel %vm2630_vm13, %v1093_v3, %v1097_v53 }
 0x302   :  { %2291 = vmatprep.subr.mxu0 %v2498_v12  ;;  %v1906_v51 = vcombine.low %v1088_v48, %v1098_v55  ;;  %v1349_v45 = vsel %vm2637_vm14, %v1347_v60, %v1348_v61  ;;  %v1346_v62 = vsel %vm2637_vm14, %v1926_v52, %v1345_v59  ;;  %v1659_v59 = vld [vmem:[%s3006_s5] sm:$0x1] }
 0x303   :  { %2292 = vmatpush3.msra.mxu0 %v2700_v16  ;;  %v1928_v63 = vcombine.low %v1346_v62, %v1349_v45  ;;  %v1663_v60 = vld [vmem:[%s3007_s6] sm:$0x1] }
 0x304   :  { %2293 = vmatprep.subr.mxu0 %v2498_v12  ;;  %2240 = vmatmul.mubr.bf16.vlgmr.msra.gmra.mxu1 %v1906_v51 }
 0x305   :  { %2294 = vmatpush3.msra.mxu0 %v2709_v17  ;;  %2264 = vmatpush3.bf16.msra.mxu1 %v2850_v7  ;;  %v2420_v7 = vld [vmem:[#allocation6 + $0x98] sm:$0xff]  }
 0x306   :  { %2279 = vmatprep.mubr.bf16.mxu1 %v1927_v57  ;;  %2265 = vmatprep.subr.bf16.mxu1 %v2417_v56 }
 0x307   :  { %2295 = vmatprep.subr.mxu0 %v2498_v12 }
 0x308   :  { %2296 = vmatpush3.msra.mxu0 %v2718_v18 }
 0x309   :  { %2297 = vmatprep.subr.mxu0 %v2498_v12  ;;  %2266 = vmatpush3.bf16.msra.mxu1 %v2417_v56 }
 0x30a   :  { %2298 = vmatpush3.msra.mxu0 %v2727_v19  ;;  %2267 = vmatprep.subr.bf16.mxu1 %v2418_v30 }
 0x30b   :  { %2299 = vmatprep.subr.mxu0 %v2498_v12 }
 0x30c   :  { %2300 = vmatpush3.msra.mxu0 %v2736_v20 }
 0x30d   :  { %2301 = vmatprep.subr.mxu0 %v2498_v12  ;;  %2268 = vmatpush3.bf16.msra.mxu1 %v2418_v30 }
 0x30e   :  { %2302 = vmatpush3.msra.mxu0 %v2745_v21  ;;  %2269 = vmatprep.subr.bf16.mxu1 %v2419_v58 }
 0x30f   :  { %2303 = vmatprep.subr.mxu0 %v2498_v12 }
 0x310   :  { %2304 = vmatpush3.msra.mxu0 %v2754_v22 }
 0x311   :  { %2305 = vmatprep.subr.mxu0 %v2498_v12  ;;  %2270 = vmatpush3.bf16.msra.mxu1 %v2419_v58 }
 0x312   :  { %2306 = vmatpush3.msra.mxu0 %v2763_v23  ;;  %2271 = vmatprep.subr.bf16.mxu1 %v2420_v7 }
 0x313   :  { %2307 = vmatprep.subr.mxu0 %v2498_v12 }
 0x314   :  { %2308 = vmatpush3.msra.mxu0 %v2769_v24 }
 0x315   :  { %2309 = vmatprep.subr.mxu0 %v2498_v12  ;;  %2272 = vmatpush3.bf16.msra.mxu1 %v2420_v7 }
 0x316   :  { %2310 = vmatpush3.msra.mxu0 %v2778_v25  ;;  %2273 = vmatprep.subr.bf16.mxu1 %v2421_v47 }
 0x317   :  { %2311 = vmatprep.subr.mxu0 %v2498_v12 }
 0x318   :  { %2312 = vmatpush3.msra.mxu0 %v2787_v26 }
 0x319   :  { %2313 = vmatprep.subr.mxu0 %v2498_v12  ;;  %2274 = vmatpush3.bf16.msra.mxu1 %v2421_v47 }
 0x31a   :  { %2314 = vmatpush3.msra.mxu0 %v2796_v27  ;;  %2275 = vmatprep.subr.bf16.mxu1 %v2422_v50 }
 0x31b   :  { %2353 = vmatprep.subr.mxu0 %v2498_v12 }
 0x31d   :  { %2276 = vmatpush3.bf16.msra.mxu1 %v2422_v50 }
 0x31e   :  { %2277 = vmatprep.subr.bf16.mxu1 %v2423_v8 }
 0x321   :  { %2278 = vmatpush3.bf16.msra.mxu1 %v2423_v8 }
 0x322   :  { %2318 = vmatprep.subr.mxu1 %v2498_v12 }
 0x324   :  { %2280 = vmatmul.mubr.bf16.vlgmr.msra.gmra.mxu1 %v1928_v63 }
 0x325   :  { %2319 = vmatpush3.msra.mxu1 %v2663_v11  ;;  %2350 = vmatprep.mubr.msk.f32.mxu1 %vm2499_vm15, %v2498_v12 }
 0x326   :  { %2320 = vmatprep.subr.mxu1 %v2498_v12 }
 0x327   :  { %2321 = vmatpush3.msra.mxu1 %v2670_v13 }
 0x328   :  { %2322 = vmatprep.subr.mxu1 %v2498_v12 }
 0x329   :  { %2323 = vmatpush3.msra.mxu1 %v2683_v14 }
 0x32a   :  { %2324 = vmatprep.subr.mxu1 %v2498_v12 }
 0x32b   :  { %2325 = vmatpush3.msra.mxu1 %v2691_v15 }
 0x32c   :  { %2326 = vmatprep.subr.mxu1 %v2498_v12 }
 0x32d   :  { %2327 = vmatpush3.msra.mxu1 %v2700_v16 }
 0x32e   :  { %2328 = vmatprep.subr.mxu1 %v2498_v12 }
 0x32f   :  { %2329 = vmatpush3.msra.mxu1 %v2709_v17 }
 0x330   :  { %2330 = vmatprep.subr.mxu1 %v2498_v12 }
 0x331   :  { %2331 = vmatpush3.msra.mxu1 %v2718_v18 }
 0x332   :  { %2332 = vmatprep.subr.mxu1 %v2498_v12 }
 0x333   :  { %2333 = vmatpush3.msra.mxu1 %v2727_v19 }
 0x334   :  { %2334 = vmatprep.subr.mxu1 %v2498_v12 }
 0x335   :  { %2335 = vmatpush3.msra.mxu1 %v2736_v20 }
 0x336   :  { %2336 = vmatprep.subr.mxu1 %v2498_v12 }
 0x337   :  { %2337 = vmatpush3.msra.mxu1 %v2745_v21 }
 0x338   :  { %2338 = vmatprep.subr.mxu1 %v2498_v12 }
 0x339   :  { %2339 = vmatpush3.msra.mxu1 %v2754_v22 }
 0x33a   :  { %2340 = vmatprep.subr.mxu1 %v2498_v12 }
 0x33b   :  { %2341 = vmatpush3.msra.mxu1 %v2763_v23 }
 0x33c   :  { %2342 = vmatprep.subr.mxu1 %v2498_v12 }
 0x33d   :  { %2343 = vmatpush3.msra.mxu1 %v2769_v24 }
 0x33e   :  { %2344 = vmatprep.subr.mxu1 %v2498_v12 }
 0x33f   :  { %2345 = vmatpush3.msra.mxu1 %v2778_v25 }
 0x340   :  { %2346 = vmatprep.subr.mxu1 %v2498_v12 }
 0x341   :  { %2347 = vmatpush3.msra.mxu1 %v2787_v26 }
 0x342   :  { %2348 = vmatprep.subr.mxu1 %v2498_v12 }
 0x343   :  { %2349 = vmatpush3.msra.mxu1 %v2796_v27 }
 0x3ba   :  { %v2261_v13 = vpop.f32.mrf.mxu0 }
 0x3bc   :  { %v1315_v15 = vpop.f32.mrf.mxu0 }
 0x3be   :  { %v2262_v17 = vpop.f32.mrf.mxu0 }
 0x3c0   :  { %v1318_v21 = vpop.f32.mrf.mxu0 }
 0x3c4   :  { %v2241_v38 = vpop.f32.mrf.mxu1 }
 0x3c5   :  { %v1324_v23 = vadd.f32 %v2261_v13, %v2241_v38 }
 0x3c6   :  { %v1206_v11 = vpop.f32.mrf.mxu1 }
 0x3c7   :  { %v1316_v20 = vadd.f32 %v1315_v15, %v1206_v11 }
 0x3c8   :  { %v2242_v14 = vpop.f32.mrf.mxu1 }
 0x3c9   :  { %v1327_v0 = vadd.f32 %v2262_v17, %v2242_v14  ;;  %v1831_v17 = vld [vmem:[%s3001_s0 + $0x10] sm:$0xff] }
 0x3ca   :  { %v1209_v16 = vpop.f32.mrf.mxu1 }
 0x3cb   :  { %v1319_v24 = vadd.f32 %v1318_v21, %v1209_v16 }
 0x3e4   :  { %v2281_v18 = vpop.f32.mrf.mxu1 }
 0x3e5   :  { %v1474_v1 = vadd.f32 %v2281_v18, %v1324_v23  ;;  %v1832_v18 = vld [vmem:[%s3001_s0 + $0x18] sm:$0xff] }
 0x3e6   :  { %v1457_v19 = vpop.f32.mrf.mxu1 }
 0x3e7   :  { %v1472_v25 = vadd.f32 %v1457_v19, %v1316_v20  ;;  %v1487_v9 = vmul.f32 %v1474_v1, %v1474_v1 }
 0x3e8   :  { %v2282_v22 = vpop.f32.mrf.mxu1 }
 0x3e9   :  { %v1485_v27 = vmul.f32 %v1472_v25, %v1472_v25  ;;  %v1475_v2 = vadd.f32 %v2282_v22, %v1327_v0 }
 0x3ea   :  { %v1460_v26 = vpop.f32.mrf.mxu1 }
 0x3eb   :  { %v1473_v4 = vadd.f32 %v1460_v26, %v1319_v24  ;;  %v1488_v32 = vmul.f32 %v1475_v2, %v1475_v2 }
 0x3ed   :  { %v1476_v5 = vadd.f32 %v1473_v4, %v1472_v25  ;;  %v1486_v6 = vmul.f32 %v1473_v4, %v1473_v4 }
 0x3ef   :  { %v1477_v10 = vadd.f32 %v1476_v5, %v1474_v1  ;;  %v1489_v31 = vadd.f32 %v1486_v6, %v1485_v27 }
 0x3f1   :  { %v1478_v33 = vadd.f32 %v1477_v10, %v1475_v2  ;;  %v1490_v34 = vadd.f32 %v1489_v31, %v1487_v9 }
 0x3f3   :  { %v1479_v35 = vrot.slane %v1478_v33, 4  ;;  %v1491_v36 = vadd.f32 %v1490_v34, %v1488_v32 }
 0x3f5   :  { %v1480_v37 = vadd.f32 %v1479_v35, %v1478_v33  ;;  %v1492_v39 = vrot.slane %v1491_v36, 4 }
 0x3f7   :  { %v1481_v40 = vrot.slane %v1480_v37, 2  ;;  %v1493_v42 = vadd.f32 %v1492_v39, %v1491_v36 }
 0x3f9   :  { %v1482_v43 = vadd.f32 %v1481_v40, %v1480_v37  ;;  %v1494_v44 = vrot.slane %v1493_v42, 2 }
 0x3fb   :  { %v1483_v46 = vrot.slane %v1482_v43, 1  ;;  %v1495_v48 = vadd.f32 %v1494_v44, %v1493_v42 }
 0x3fd   :  { %v1484_v3 = vadd.f32 %v1483_v46, %v1482_v43  ;;  %v1496_v53 = vrot.slane %v1495_v48, 1 }
 0x3ff   :  { %2316 = vmatmul.mubr.f32.vlgmr.msra.gmra.mxu0 %v1484_v3  ;;  %v1497_v54 = vadd.f32 %v1496_v53, %v1495_v48 }
 0x400   :  { %2354 = vmatpush3.msra.mxu0 %v2834_v29  ;;  %2355 = vmatprep.mubr.msk.f32.mxu0 %vm2499_vm15, %v2498_v12 }
 0x401   :  { %2351 = vmatmul.mubr.f32.vlgmr.msra.gmra.mxu1 %v1497_v54  ;;  %2358 = vmatprep.subr.mxu0 %v2498_v12 }
 0x4bf   :  { %v1580_v55 = vpop.f32.mrf.mxu0 }
 0x4c0   :  { %v1654_v51 = vmul.f32 0.001953125, %v1580_v55 }
 0x4c1   :  { %v2317_v41 = vpop.f32.mrf.mxu0  ;;  %v1650_v56 = vpop.f32.mrf.mxu1 }
 0x4c2   :  { %v1656_v57 = vmul.f32 %v1654_v51, %v1654_v51  ;;  %v1655_v30 = vmul.f32 0.001953125, %v1650_v56 }
 0x4c3   :  { %v2352_v58 = vpop.f32.mrf.mxu1 }
 0x4c4   :  { %v1657_v7 = vsub.f32 %v1655_v30, %v1656_v57 }
 0x4c6   :  { %v1658_v47 = vmax.f32 %v1657_v7, 0.0 }
 0x4c8   :  { %v1660_v50 = vadd.f32 1e-05, %v1658_v47 }
 0x4ca   :  { %2426 = vrsqrt.f32 %v1660_v50 }
 0x4d7   :  { %v2427_v8 = vpop.eup %2426 }
 0x4d8   :  { %v1662_v49 = vmul.f32 %v2427_v8, %v1659_v59 }
 0x4da   :  { %2356 = vmatmul.mubr.msk.f32.vlgmr.msra.gmra.mxu0 %vm797_vm0, %v1662_v49  ;;  %v1664_v52 = vmul.f32 %v1662_v49, %v1654_v51 }
 0x4db   :  { %2359 = vmatpush3.msra.mxu0 %v2834_v29  ;;  %2360 = vmatprep.mubr.msk.f32.mxu0 %vm2499_vm15, %v2498_v12  ;;  %v1829_v29 = vld [vmem:[%s3001_s0] sm:$0xff]  ;;  %v1830_v12 = vld [vmem:[%s3001_s0 + $0x8] sm:$0xff]  ;;  %s2468_s0 = scalar_lea.vmem %s1851_s26, 512 }
 0x4dc   :  { %v1665_v61 = vsub.f32 %v1663_v60, %v1664_v52  ;;  %p2469_p10 = scmp.ne.s32.totalorder %s1851_s26, %s2468_s0  ;;  %p2474_p12 = scmp.lt.s32.totalorder %s2468_s0, %s2468_s0 }
 0x4de   :  { %2361 = vmatmul.mubr.msk.f32.vlgmr.msra.gmra.mxu0 %vm797_vm0, %v1665_v61  ;;  %p2475_p13 = por %p2474_p12, %p2473_p11 }
 0x4e0   :  { %p2476_p0 = pnand %p2475_p13, %p2469_p10 }
 0x59a   :  { %v1736_v45 = vpop.f32.mrf.mxu0 }
 0x59b   :  { %v1816_v62 = vrot.slane %v1736_v45, %v2853_v28 }
 0x59c   :  { %v2357_v63 = vpop.f32.mrf.mxu0 }
 0x59d   :  { %v1817_v38 = vmul.f32 %v1816_v62, %v1472_v25  ;;  %v1818_v13 = vmul.f32 %v1816_v62, %v1473_v4  ;;  %v1819_v14 = vmul.f32 %v1816_v62, %v1474_v1  ;;  %v1820_v15 = vmul.f32 %v1816_v62, %v1475_v2 }
 0x59e   :  { %v1809_v11 = vpop.f32.mrf.mxu0 }
 0x59f   :  { %v1824_v16 = vrot.slane %v1809_v11, %v2853_v28 }
 0x5a0   :  { %v2362_v19 = vpop.f32.mrf.mxu0 }
 0x5a1   :  { %v1825_v20 = vadd.f32 %v1824_v16, %v1817_v38  ;;  %v1826_v21 = vadd.f32 %v1824_v16, %v1818_v13  ;;  %v1827_v28 = vadd.f32 %v1824_v16, %v1819_v14  ;;  %v1828_v22 = vadd.f32 %v1824_v16, %v1820_v15 }
 0x5a3   :  { %v1833_v23 = vadd.f32 %v1829_v29, %v1825_v20  ;;  %v1834_v24 = vadd.f32 %v1830_v12, %v1826_v21  ;;  %v1835_v25 = vadd.f32 %v1831_v17, %v1827_v28  ;;  %v1836_v26 = vadd.f32 %v1832_v18, %v1828_v22 }
 0x5a5   :  { %v1837_v0 = vmax.f32 %v1833_v23, 0.0  ;;  %v1838_v1 = vmax.f32 %v1834_v24, 0.0  ;;  %v1839_v4 = vmax.f32 %v1835_v25, 0.0  ;;  %v1840_v27 = vmax.f32 %v1836_v26, 0.0 }
 0x5a7   :  { %1841 = vst [vmem:[#allocation8] sm:$0xff] %v1837_v0  ;;  %1842 = vst [vmem:[#allocation8 + $0x8] sm:$0xff] %v1838_v1 }
 0x5a8   :  { %1843 = vst [vmem:[#allocation8 + $0x10] sm:$0xff] %v1839_v4  ;;  %1844 = vst [vmem:[#allocation8 + $0x18] sm:$0xff] %v1840_v27 }
 0x5a9   :  { %2479 = shalt.err (!%p2476_p0)
}
 0x5aa   :  { %s2501_s27 = smov 128   ;;  %s2502_s28 = smov 8  }
 0x5ab   :  { %1856 = dma.vmem_to_hbm [thread:$0]  %s1851_s26, 512, %s3010_s9, [#allocation5], %s2501_s27, %s2501_s27, %s2502_s28  }
 0x5ac   :  { %2492 = dma.done.wait [#allocation5], 512  }
 0x5ad   :  { %2493 = vsyncadd [#allocation5], 4294966784 }
 0x5ae   :  { %1860 = vsyncpa [#allocation4], 1 }
 0x5af   :  { %1861 = vsyncpa [#allocation7], 1 }
 0x5b0   :  { %1862 = vsyncpa [#allocation5], 1 }

</bundles_post_ra>
